<compile_context>
chip_gen: v6e
topology: v6e:2x2x1
jax: 0.10.0
libtpu: 0.0.40
codegen_flags: <defaults>
</compile_context>

<pallas_src>
import jax
import jax.numpy as jnp
from jax.experimental import pallas as pl
from jax.experimental.pallas import tpu as pltpu


# ----------------------------- Pallas kernel --------------------------------
def inception_aux_kernel(x_ref, pool_ref, w1_ref, b1_ref, w2_ref, b2_ref,
                         w3_ref, b3_ref, o_ref):
    xf = x_ref[...]                                                   # (B, L*Cin)

    # AvgPool1d(kernel_size=5, stride=3): one matmul with a structural averaging
    # matrix (exact lowering of the pooling).
    pooled = jnp.dot(xf, pool_ref[...],
                     preferred_element_type=jnp.float32)              # (B, L1*Cin)

    # auxiliary_conv1: Conv1d(k=1) + folded BatchNorm + ReLU6, all pooled positions
    # in one matmul (block-diagonal weight built in the wrapper).
    h1 = jnp.dot(pooled, w1_ref[...],
                 preferred_element_type=jnp.float32) + b1_ref[...]    # (B, L1*128)
    h1 = jnp.clip(h1, 0.0, 6.0)                                       # ReLU6

    # auxiliary_conv2: Conv1d(k=5, stride=1, valid) with output length 1
    # == flatten + single matmul over K = L1*128.
    y = jnp.dot(h1, w2_ref[...],
                preferred_element_type=jnp.float32) + b2_ref[...]     # (B, 768)

    # x.view(B, -1) is a no-op here (spatial length 1).
    # TODO(synk): Dropout(p=0.7) is the inference-mode identity; training-mode
    # stochastic masking is not implemented in this forward kernel.

    # auxiliary_linear1: Linear(768 -> n_out), zero-padded to 128 output lanes so
    # the single store is lane-dense.
    out = jnp.dot(y, w3_ref[...],
                  preferred_element_type=jnp.float32) + b3_ref[...]   # (B, 128)
    o_ref[...] = out.astype(o_ref.dtype)


# ------------------------------- wrapper -------------------------------------
def inception_aux_forward(x_ncl, fused_params, n_out):
    """x_ncl: (B, Cin, L) float32 (PyTorch NCL layout). Returns (B, n_out)."""
    B, Cin, L = x_ncl.shape
    # Layout plumbing only: NCL -> (B, L*Cin) row-major so the kernel sees 2-D
    # (batch rows x feature lanes).
    x_flat = jnp.transpose(x_ncl, (0, 2, 1)).reshape(B, L * Cin)

    args = (x_flat,) + tuple(fused_params)

    out_padded = pl.pallas_call(
        inception_aux_kernel,
        out_shape=jax.ShapeDtypeStruct((B, 128), jnp.float32),
        grid_spec=pltpu.PrefetchScalarGridSpec(
            num_scalar_prefetch=0,
            grid=(1,),  # single step: whole batch + all weights staged once
            in_specs=[pl.BlockSpec(a.shape, lambda i, nd=a.ndim: (0,) * nd)
                      for a in args],
            out_specs=pl.BlockSpec((B, 128), lambda i: (0, 0)),
        ),
        compiler_params=pltpu.CompilerParams(
            dimension_semantics=("arbitrary",)),
    )(*args)

    return out_padded[:, :n_out]


# ----------------------- parameter construction ------------------------------
def build_fused_params(raw, L, Cin, eps=1e-5):
    """Fold BN into conv1 and pre-pack every stage as a single matmul operand."""
    L1 = (L - 5) // 3 + 1           # AvgPool1d(k=5, s=3) output length
    assert L1 - 4 == 1, "spec requires conv2 (k=5, valid) output length == 1"

    # AvgPool1d as a (L*Cin, L1*Cin) structural matrix: position-average kron identity.
    l_idx = jnp.arange(L)[:, None]
    t_idx = jnp.arange(L1)[None, :]
    p_pos = ((l_idx >= 3 * t_idx) & (l_idx < 3 * t_idx + 5)).astype(jnp.float32) / 5.0
    pool_mat = jnp.kron(p_pos, jnp.eye(Cin, dtype=jnp.float32))        # (L*Cin, L1*Cin)

    # conv1 (k=1) + BatchNorm folding: y = scale*(x@W + b - mean) + beta
    scale = raw["gamma"] / jnp.sqrt(raw["var"] + eps)                  # (128,)
    w1 = raw["w1"][:, :, 0].T * scale                                  # (Cin, 128)
    b1 = (raw["b1"] - raw["mean"]) * scale + raw["beta"]               # (128,)
    # Block-diagonal tiling so all L1 positions share one matmul.
    w1_bd = jnp.kron(jnp.eye(L1, dtype=jnp.float32), w1)               # (L1*Cin, L1*128)
    b1_big = jnp.tile(b1.reshape(1, -1), (1, L1))                      # (1, L1*128)

    # conv2 (k=5, valid, out length 1): flattened weight, t-major / channel-minor to
    # match the kernel's (t*128 + c) feature order.
    w2 = jnp.transpose(raw["w2"], (2, 1, 0)).reshape(L1 * 128, 768)    # (640, 768)
    b2 = raw["b2"].reshape(1, -1)                                      # (1, 768)

    # final linear, zero-padded to 128 output lanes (lane-dense store).
    n_out = raw["w3"].shape[0]
    assert n_out <= 128
    pad = 128 - n_out
    w3 = jnp.pad(raw["w3"].T, ((0, 0), (0, pad)))                      # (768, 128)
    b3 = jnp.pad(raw["b3"].reshape(1, -1), ((0, 0), (0, pad)))         # (1, 128)

    return (pool_mat, w1_bd, b1_big, w2, b2, w3, b3), n_out


# --------------------------- pure-JAX reference -------------------------------
def ref_forward(x_ncl, raw, eps=1e-5):
    """Direct (unfolded) evaluation of the InceptionAux forward in inference mode."""
    x = jnp.transpose(x_ncl, (0, 2, 1))                                # (B, L, Cin)
    B, L, Cin = x.shape
    L1 = (L - 5) // 3 + 1

    # AvgPool1d(k=5, s=3)
    pooled = jnp.stack([jnp.mean(x[:, 3 * t:3 * t + 5, :], axis=1)
                        for t in range(L1)], axis=1)                   # (B, L1, Cin)

    # conv1 (k=1) + BN(inference) + ReLU6
    w1 = raw["w1"][:, :, 0].T                                          # (Cin, 128)
    h = jnp.einsum("blc,cd->bld", pooled, w1) + raw["b1"]
    h = (h - raw["mean"]) / jnp.sqrt(raw["var"] + eps) * raw["gamma"] + raw["beta"]
    h = jnp.clip(h, 0.0, 6.0)                                          # (B, L1, 128)

    # conv2 (k=5, valid) -> output length 1
    y = jnp.einsum("btc,oct->bo", h, raw["w2"]) + raw["b2"]            # (B, 768)

    # flatten (length-1 spatial), dropout (eval) identity, linear
    return y @ raw["w3"].T + raw["b3"]                                 # (B, n_out)


# ---------------------------------- main --------------------------------------
if __name__ == "__main__":
    in_channels = 4
    num_classes = 10
    B, L = 2, 17   # L=17 -> avgpool(k=5,s=3) length 5 -> conv2(k=5, valid) length 1

    key = jax.random.PRNGKey(0)
    ks = jax.random.split(key, 11)

    # PyTorch-layout input: (B, Cin, L)
    x_ncl = jax.random.normal(ks[0], (B, in_channels, L), jnp.float32)

    # Deterministic module parameters (PyTorch layouts).
    raw = dict(
        w1=0.2 * jax.random.normal(ks[1], (128, in_channels, 1), jnp.float32),
        b1=0.1 * jax.random.normal(ks[2], (128,), jnp.float32),
        gamma=1.0 + 0.1 * jax.random.normal(ks[3], (128,), jnp.float32),
        beta=0.1 * jax.random.normal(ks[4], (128,), jnp.float32),
        mean=0.1 * jax.random.normal(ks[5], (128,), jnp.float32),
        var=jnp.abs(jax.random.normal(ks[6], (128,), jnp.float32)) + 0.5,
        w2=0.05 * jax.random.normal(ks[7], (768, 128, 5), jnp.float32),
        b2=0.1 * jax.random.normal(ks[8], (768,), jnp.float32),
        w3=0.05 * jax.random.normal(ks[9], (num_classes, 768), jnp.float32),
        b3=0.1 * jax.random.normal(ks[10], (num_classes,), jnp.float32),
    )

    fused, n_out = build_fused_params(raw, L, in_channels)

    out = inception_aux_forward(x_ncl, fused, n_out)
    out = jax.block_until_ready(out)

    ref = ref_forward(x_ncl, raw)
    assert out.shape == (B, num_classes)
    assert jnp.allclose(out, ref, atol=2e-3, rtol=2e-3), (
        f"mismatch vs reference: max abs err {jnp.max(jnp.abs(out - ref))}")

    print("KERNEL_OK")
</pallas_src>

<mosaic_0001>
module attributes {stable_mosaic.version = 11 : i64} {
  func.func @inception_aux_kernel(%arg0: i32, %arg1: memref<2x68xf32, #tpu.memory_space<vmem>>, %arg2: memref<68x20xf32, #tpu.memory_space<vmem>>, %arg3: memref<20x640xf32, #tpu.memory_space<vmem>>, %arg4: memref<1x640xf32, #tpu.memory_space<vmem>>, %arg5: memref<640x768xf32, #tpu.memory_space<vmem>>, %arg6: memref<1x768xf32, #tpu.memory_space<vmem>>, %arg7: memref<768x128xf32, #tpu.memory_space<vmem>>, %arg8: memref<1x128xf32, #tpu.memory_space<vmem>>, %arg9: memref<2x128xf32, #tpu.memory_space<vmem>>) attributes {dimension_semantics = [#tpu.dimension_semantics<arbitrary>], iteration_bounds = array<i64: 1>, scalar_prefetch = 0 : i64, scratch_operands = 0 : i64, tpu.core_type = #tpu.core_type<tc>, window_params = [{pipeline_mode = #tpu.pipeline_mode<synchronous>, transform_indices = @transform_0, window_bounds = array<i64: 2, 68>}, {pipeline_mode = #tpu.pipeline_mode<synchronous>, transform_indices = @transform_1, window_bounds = array<i64: 68, 20>}, {pipeline_mode = #tpu.pipeline_mode<synchronous>, transform_indices = @transform_2, window_bounds = array<i64: 20, 640>}, {pipeline_mode = #tpu.pipeline_mode<synchronous>, transform_indices = @transform_3, window_bounds = array<i64: 1, 640>}, {pipeline_mode = #tpu.pipeline_mode<synchronous>, transform_indices = @transform_4, window_bounds = array<i64: 640, 768>}, {pipeline_mode = #tpu.pipeline_mode<synchronous>, transform_indices = @transform_5, window_bounds = array<i64: 1, 768>}, {pipeline_mode = #tpu.pipeline_mode<synchronous>, transform_indices = @transform_6, window_bounds = array<i64: 768, 128>}, {pipeline_mode = #tpu.pipeline_mode<synchronous>, transform_indices = @transform_7, window_bounds = array<i64: 1, 128>}, {pipeline_mode = #tpu.pipeline_mode<synchronous>, transform_indices = @transform_8, window_bounds = array<i64: 2, 128>}]} {
    %c0 = arith.constant 0 : index
    %c0_0 = arith.constant 0 : index
    %0 = vector.load %arg1[%c0, %c0_0] : memref<2x68xf32, #tpu.memory_space<vmem>>, vector<2x68xf32>
    %c0_1 = arith.constant 0 : index
    %c0_2 = arith.constant 0 : index
    %1 = vector.load %arg2[%c0_1, %c0_2] : memref<68x20xf32, #tpu.memory_space<vmem>>, vector<68x20xf32>
    %cst = arith.constant dense<0.000000e+00> : vector<2x20xf32>
    %2 = tpu.matmul %0, %1, %cst {dimension_numbers = #tpu.dot_dimension_numbers<[1], [0], [0], [1], [0, 0, 1, 1], [], []>} : vector<2x68xf32>, vector<68x20xf32>, vector<2x20xf32> -> vector<2x20xf32>
    %c0_3 = arith.constant 0 : index
    %c0_4 = arith.constant 0 : index
    %3 = vector.load %arg3[%c0_3, %c0_4] : memref<20x640xf32, #tpu.memory_space<vmem>>, vector<20x640xf32>
    %cst_5 = arith.constant dense<0.000000e+00> : vector<2x640xf32>
    %4 = tpu.matmul %2, %3, %cst_5 {dimension_numbers = #tpu.dot_dimension_numbers<[1], [0], [0], [1], [0, 0, 1, 1], [], []>} : vector<2x20xf32>, vector<20x640xf32>, vector<2x640xf32> -> vector<2x640xf32>
    %c0_6 = arith.constant 0 : index
    %c0_7 = arith.constant 0 : index
    %5 = vector.load %arg4[%c0_6, %c0_7] : memref<1x640xf32, #tpu.memory_space<vmem>>, vector<1x640xf32>
    %6 = vector.broadcast %5 : vector<1x640xf32> to vector<2x640xf32>
    %7 = arith.addf %4, %6 : vector<2x640xf32>
    %cst_8 = arith.constant 0.000000e+00 : f32
    %cst_9 = arith.constant 6.000000e+00 : f32
    %8 = vector.broadcast %cst_8 : f32 to vector<2x640xf32>
    %9 = arith.maximumf %8, %7 : vector<2x640xf32>
    %10 = vector.broadcast %cst_9 : f32 to vector<2x640xf32>
    %11 = arith.minimumf %10, %9 : vector<2x640xf32>
    %c0_10 = arith.constant 0 : index
    %c0_11 = arith.constant 0 : index
    %12 = vector.load %arg5[%c0_10, %c0_11] : memref<640x768xf32, #tpu.memory_space<vmem>>, vector<640x768xf32>
    %cst_12 = arith.constant dense<0.000000e+00> : vector<2x768xf32>
    %13 = tpu.matmul %11, %12, %cst_12 {dimension_numbers = #tpu.dot_dimension_numbers<[1], [0], [0], [1], [0, 0, 1, 1], [], []>} : vector<2x640xf32>, vector<640x768xf32>, vector<2x768xf32> -> vector<2x768xf32>
    %c0_13 = arith.constant 0 : index
    %c0_14 = arith.constant 0 : index
    %14 = vector.load %arg6[%c0_13, %c0_14] : memref<1x768xf32, #tpu.memory_space<vmem>>, vector<1x768xf32>
    %15 = vector.broadcast %14 : vector<1x768xf32> to vector<2x768xf32>
    %16 = arith.addf %13, %15 : vector<2x768xf32>
    %c0_15 = arith.constant 0 : index
    %c0_16 = arith.constant 0 : index
    %17 = vector.load %arg7[%c0_15, %c0_16] : memref<768x128xf32, #tpu.memory_space<vmem>>, vector<768x128xf32>
    %cst_17 = arith.constant dense<0.000000e+00> : vector<2x128xf32>
    %18 = tpu.matmul %16, %17, %cst_17 {dimension_numbers = #tpu.dot_dimension_numbers<[1], [0], [0], [1], [0, 0, 1, 1], [], []>} : vector<2x768xf32>, vector<768x128xf32>, vector<2x128xf32> -> vector<2x128xf32>
    %c0_18 = arith.constant 0 : index
    %c0_19 = arith.constant 0 : index
    %19 = vector.load %arg8[%c0_18, %c0_19] : memref<1x128xf32, #tpu.memory_space<vmem>>, vector<1x128xf32>
    %20 = vector.broadcast %19 : vector<1x128xf32> to vector<2x128xf32>
    %21 = arith.addf %18, %20 : vector<2x128xf32>
    %c0_20 = arith.constant 0 : index
    %c0_21 = arith.constant 0 : index
    %22 = vector.load %arg9[%c0_20, %c0_21] : memref<2x128xf32, #tpu.memory_space<vmem>>, vector<2x128xf32>
    tpu.vector_store %arg9[%c0_20, %c0_21], %21 {strides = array<i32>} : memref<2x128xf32, #tpu.memory_space<vmem>>, vector<2x128xf32>,
    return
  }
  func.func @transform_0(%arg0: i32) -> (i32, i32) {
    %c0_i32 = arith.constant 0 : i32
    %c0_i32_0 = arith.constant 0 : i32
    %c0_i32_1 = arith.constant 0 : i32
    return %c0_i32, %c0_i32_0 : i32, i32
  }
  func.func @transform_1(%arg0: i32) -> (i32, i32) {
    %c0_i32 = arith.constant 0 : i32
    %c0_i32_0 = arith.constant 0 : i32
    %c0_i32_1 = arith.constant 0 : i32
    return %c0_i32, %c0_i32_0 : i32, i32
  }
  func.func @transform_2(%arg0: i32) -> (i32, i32) {
    %c0_i32 = arith.constant 0 : i32
    %c0_i32_0 = arith.constant 0 : i32
    %c0_i32_1 = arith.constant 0 : i32
    return %c0_i32, %c0_i32_0 : i32, i32
  }
  func.func @transform_3(%arg0: i32) -> (i32, i32) {
    %c0_i32 = arith.constant 0 : i32
    %c0_i32_0 = arith.constant 0 : i32
    %c0_i32_1 = arith.constant 0 : i32
    return %c0_i32, %c0_i32_0 : i32, i32
  }
  func.func @transform_4(%arg0: i32) -> (i32, i32) {
    %c0_i32 = arith.constant 0 : i32
    %c0_i32_0 = arith.constant 0 : i32
    %c0_i32_1 = arith.constant 0 : i32
    return %c0_i32, %c0_i32_0 : i32, i32
  }
  func.func @transform_5(%arg0: i32) -> (i32, i32) {
    %c0_i32 = arith.constant 0 : i32
    %c0_i32_0 = arith.constant 0 : i32
    %c0_i32_1 = arith.constant 0 : i32
    return %c0_i32, %c0_i32_0 : i32, i32
  }
  func.func @transform_6(%arg0: i32) -> (i32, i32) {
    %c0_i32 = arith.constant 0 : i32
    %c0_i32_0 = arith.constant 0 : i32
    %c0_i32_1 = arith.constant 0 : i32
    return %c0_i32, %c0_i32_0 : i32, i32
  }
  func.func @transform_7(%arg0: i32) -> (i32, i32) {
    %c0_i32 = arith.constant 0 : i32
    %c0_i32_0 = arith.constant 0 : i32
    %c0_i32_1 = arith.constant 0 : i32
    return %c0_i32, %c0_i32_0 : i32, i32
  }
  func.func @transform_8(%arg0: i32) -> (i32, i32) {
    %c0_i32 = arith.constant 0 : i32
    %c0_i32_0 = arith.constant 0 : i32
    %c0_i32_1 = arith.constant 0 : i32
    return %c0_i32, %c0_i32_0 : i32, i32
  }
}

</mosaic_0001>

<bundles_post_ra>
// kernel: tpu_custom_call.1
= control target key start
LH: loop header
LB: loop body
LE: loop exit
PB: predicated region body
PF: predicated region fallthrough
CT: control target
= control target key end

     0   :  { %13 = vsyncpa [#allocation3], 0  ;;  %s2530_s0 = inlined_call_operand.hbm [shape: f32[2,68], index: 0, kind: input, shape index: {}]   ;;  %s2531_s1 = inlined_call_operand.vmem [shape: f32[68,20], index: 1, kind: input, shape index: {}]   ;;  %s2532_s2 = inlined_call_operand.hbm [shape: f32[20,640], index: 2, kind: input, shape index: {}]   ;;  %s2533_s3 = inlined_call_operand.hbm [shape: f32[1,640], index: 3, kind: input, shape index: {}]   ;;  %s2534_s4 = inlined_call_operand.hbm [shape: f32[640,768], index: 4, kind: input, shape index: {}]   ;;  %s2535_s5 = inlined_call_operand.hbm [shape: f32[1,768], index: 5, kind: input, shape index: {}]   ;;  %s2536_s6 = inlined_call_operand.hbm [shape: f32[768,128], index: 6, kind: input, shape index: {}]   ;;  %s2537_s7 = inlined_call_operand.hbm [shape: f32[1,128], index: 7, kind: input, shape index: {}]   ;;  %s2538_s8 = inlined_call_operand.hbm [shape: f32[2,128], index: 8, kind: output, shape index: {}]  }
   0x1   :  { %14 = vsyncpa [#allocation6], 0 }
   0x2   :  { %15 = vsyncpa [#allocation9], 0 }
   0x3   :  { %16 = vsyncpa [#allocation12], 0 }
   0x4   :  { %17 = vsyncpa [#allocation4], 0  ;;  %s2317_s27 = smov [#allocation5]  }
   0x5   :  { %s35_s28 = sshll.u32 %s2317_s27, 4  ;;  %s36_s28 = int_to_ptr.vmem [resolvable:$true] %s35_s28 }
   0x6   :  { %s2155_s29 = scalar_lea.vmem %s36_s28, 1920  ;;  %p2160_p1 = scmp.lt.s32.totalorder %s36_s28, %s36_s28 }
   0x7   :  { %p2156_p0 = scmp.ne.s32.totalorder %s36_s28, %s2155_s29  ;;  %p2161_p2 = scmp.lt.s32.totalorder %s2155_s29, %s2155_s29 }
   0x9   :  { %p2162_p3 = por %p2161_p2, %p2160_p1 }
   0xb   :  { %p2163_p4 = pnand %p2162_p3, %p2156_p0 }
   0xd   :  { %2166 = shalt.err (!%p2163_p4)
}
   0xe   :  { %s2318_s30 = smov 640   ;;  %s2319_s9 = smov 40  }
   0xf   :  { %41 = dma.hbm_to_vmem [thread:$0]  %s2532_s2, 1920, %s36_s28, [#allocation6], %s2318_s30, %s2318_s30, %s2319_s9  }
  0x10   :  { %s2320_s12 = smov [#allocation8]  }
  0x11   :  { %s57_s13 = sshll.u32 %s2320_s12, 4  ;;  %s58_s13 = int_to_ptr.vmem [resolvable:$true] %s57_s13 }
  0x12   :  { %s2175_s14 = scalar_lea.vmem %s58_s13, 61440  ;;  %p2180_p6 = scmp.lt.s32.totalorder %s58_s13, %s58_s13 }
  0x13   :  { %p2176_p5 = scmp.ne.s32.totalorder %s58_s13, %s2175_s14  ;;  %p2181_p7 = scmp.lt.s32.totalorder %s2175_s14, %s2175_s14 }
  0x15   :  { %p2182_p8 = por %p2181_p7, %p2180_p6 }
  0x17   :  { %p2183_p9 = pnand %p2182_p8, %p2176_p5 }
  0x19   :  { %2186 = shalt.err (!%p2183_p9)
}
  0x1a   :  { %s2321_s15 = smov 768   ;;  %s2322_s16 = smov 48  }
  0x1b   :  { %63 = dma.hbm_to_vmem [thread:$0]  %s2534_s4, 61440, %s58_s13, [#allocation9], %s2321_s15, %s2321_s15, %s2322_s16  }
  0x1c   :  { %s2323_s19 = smov [#allocation11]  }
  0x1d   :  { %s79_s20 = sshll.u32 %s2323_s19, 4  ;;  %s80_s20 = int_to_ptr.vmem [resolvable:$true] %s79_s20 }
  0x1e   :  { %s2195_s2 = scalar_lea.vmem %s80_s20, 12288  ;;  %p2200_p11 = scmp.lt.s32.totalorder %s80_s20, %s80_s20 }
  0x1f   :  { %p2196_p10 = scmp.ne.s32.totalorder %s80_s20, %s2195_s2  ;;  %p2201_p12 = scmp.lt.s32.totalorder %s2195_s2, %s2195_s2 }
  0x21   :  { %p2202_p13 = por %p2201_p12, %p2200_p11 }
  0x23   :  { %p2203_p0 = pnand %p2202_p13, %p2196_p10 }
  0x25   :  { %2206 = shalt.err (!%p2203_p0)
}
  0x26   :  { %s2324_s21 = smov 128   ;;  %s2325_s22 = smov 8  }
  0x27   :  { %85 = dma.hbm_to_vmem [thread:$0]  %s2536_s6, 12288, %s80_s20, [#allocation12], %s2324_s21, %s2324_s21, %s2325_s22  }
  0x28   :  { %s2326_s25 = smov [#allocation2]   ;;  %s2327_s4 = smov [#allocation7]  }
  0x29   :  { %s24_s26 = sshll.u32 %s2326_s25, 4  ;;  %s48_s27 = sshll.u32 %s2327_s4, 4  ;;  %s25_s26 = int_to_ptr.vmem [resolvable:$true] %s24_s26  ;;  %s49_s27 = int_to_ptr.vmem [resolvable:$true] %s48_s27 }
  0x2a   :  { %s2215_s28 = scalar_lea.vmem %s25_s26, 32  ;;  %p2220_p2 = scmp.lt.s32.totalorder %s25_s26, %s25_s26 }
  0x2b   :  { %p2216_p1 = scmp.ne.s32.totalorder %s25_s26, %s2215_s28  ;;  %p2221_p3 = scmp.lt.s32.totalorder %s2215_s28, %s2215_s28 }
  0x2d   :  { %p2222_p4 = por %p2221_p3, %p2220_p2 }
  0x2f   :  { %p2223_p5 = pnand %p2222_p4, %p2216_p1 }
  0x31   :  { %2226 = shalt.err (!%p2223_p5)
}
  0x32   :  { %27 = dma.hbm_to_vmem [thread:$0]  %s2530_s0, 32, %s25_s26, [#allocation3]  }
  0x33   :  { %s2235_s9 = scalar_lea.vmem %s49_s27, 80  ;;  %s2239_s6 = scalar_lea.vmem %s49_s27, 96 }
  0x34   :  { %p2236_p6 = scmp.ne.s32.totalorder %s49_s27, %s2235_s9  ;;  %p2240_p7 = scmp.lt.s32.totalorder %s49_s27, %s49_s27 }
  0x35   :  { %p2241_p8 = scmp.lt.s32.totalorder %s2239_s6, %s2235_s9 }
  0x37   :  { %p2242_p9 = por %p2241_p8, %p2240_p7 }
  0x39   :  { %p2243_p10 = pnand %p2242_p9, %p2236_p6 }
  0x3b   :  { %2246 = shalt.err (!%p2243_p10)
}
  0x3c   :  { %51 = dma.hbm_to_vmem [thread:$0]  %s2533_s3, 80, %s49_s27, [#allocation6]  }
  0x3d   :  { %s2328_s12 = smov [#allocation10]   ;;  %s2329_s14 = smov [#allocation13]  }
  0x3e   :  { %s70_s13 = sshll.u32 %s2328_s12, 4  ;;  %s92_s15 = sshll.u32 %s2329_s14, 4  ;;  %s71_s13 = int_to_ptr.vmem [resolvable:$true] %s70_s13  ;;  %s93_s15 = int_to_ptr.vmem [resolvable:$true] %s92_s15 }
  0x3f   :  { %s2255_s16 = scalar_lea.vmem %s71_s13, 96  ;;  %p2260_p12 = scmp.lt.s32.totalorder %s71_s13, %s71_s13 }
  0x40   :  { %p2256_p11 = scmp.ne.s32.totalorder %s71_s13, %s2255_s16  ;;  %p2261_p13 = scmp.lt.s32.totalorder %s2255_s16, %s2255_s16 }
  0x42   :  { %p2262_p0 = por %p2261_p13, %p2260_p12 }
  0x44   :  { %p2263_p1 = pnand %p2262_p0, %p2256_p11 }
  0x46   :  { %2266 = shalt.err (!%p2263_p1)
}
  0x47   :  { %73 = dma.hbm_to_vmem [thread:$0]  %s2535_s5, 96, %s71_s13, [#allocation9]  }
  0x48   :  { %s2275_s18 = scalar_lea.vmem %s93_s15, 16  ;;  %s2279_s3 = scalar_lea.vmem %s93_s15, 32 }
  0x49   :  { %p2276_p2 = scmp.ne.s32.totalorder %s93_s15, %s2275_s18  ;;  %p2280_p3 = scmp.lt.s32.totalorder %s93_s15, %s93_s15 }
  0x4a   :  { %p2281_p4 = scmp.lt.s32.totalorder %s2279_s3, %s2275_s18 }
  0x4c   :  { %p2282_p5 = por %p2281_p4, %p2280_p3 }
  0x4e   :  { %p2283_p6 = pnand %p2282_p5, %p2276_p2 }
  0x50   :  { %2286 = shalt.err (!%p2283_p6)
}
  0x51   :  { %95 = dma.hbm_to_vmem [thread:$0]  %s2537_s7, 16, %s93_s15, [#allocation12]  }
  0x52   :  { %2307 = dma.done.wait [#allocation3], 32  }
  0x53   :  { %2308 = vsyncadd [#allocation3], 4294967264 }
  0x54   :  { %2309 = dma.done.wait [#allocation6], 2000  }
  0x55   :  { %2310 = vsyncadd [#allocation6], 4294965296 }
  0x56   :  { %2311 = dma.done.wait [#allocation9], 61536  }
  0x57   :  { %2312 = vsyncadd [#allocation9], 4294905760 }
  0x58   :  { %2313 = dma.done.wait [#allocation12], 12304  }
  0x59   :  { %2314 = vsyncadd [#allocation12], 4294954992  ;;  %v2330_v0 = vmov 0.0   ;;  %vm2331_vm0 = vmmov 0   ;;  %vm131_vm1 = vcmask 1043456   ;;  %v125_v2 = vld [vmem:[%s2531_s1 + $0x38] sm:$0xff] }
  0x5a   :  { %2101 = vmatprep.subr.mxu0 %v2330_v0  ;;  %2119 = vmatprep.mubr.msk.f32.mxu0 %vm2331_vm0, %v2330_v0  ;;  %v126_v1 = vld [vmem:[%s2531_s1 + $0x40] sm:$0xf]  ;;  %v124_v3 = vld [vmem:[%s2531_s1 + $0x30] sm:$0xff]  ;;  %v216_v4 = vld [vmem:[#allocation5 + $0x58] sm:$0xf]  ;;  %vm127_vm2 = vcmask 556032  }
  0x5b   :  { %330 = vmatprep.mubr.f32.mxu1 %v2330_v0  ;;  %2102 = vmatpush3.msk.msra.mxu0 %vm131_vm1, %v126_v1  ;;  %v215_v5 = vld [vmem:[#allocation5 + $0x50] sm:$0xf]  ;;  %v123_v6 = vld [vmem:[%s2531_s1 + $0x28] sm:$0xff]  ;;  %v122_v10 = vld [vmem:[%s2531_s1 + $0x20] sm:$0xff]  ;;  %vm247_vm3 = vcmask 162816  }
  0x5c   :  { %2103 = vmatprep.subr.mxu0 %v2330_v0  ;;  %1973 = vmatprep.subr.msk.mxu1 %vm131_vm1, %v216_v4  ;;  %v211_v7 = vld [vmem:[#allocation5 + $0x30] sm:$0xff]  ;;  %v210_v8 = vld [vmem:[#allocation5 + $0x28] sm:$0xff]  ;;  %v205_v11 = vld [vmem:[#allocation5] sm:$0xff] }
  0x5d   :  { %2104 = vmatpush3.msra.mxu0 %v125_v2  ;;  %1974 = vmatpush1.msk.msra.mxu1 %vm131_vm1, %v215_v5  ;;  %v206_v9 = vld [vmem:[#allocation5 + $0x8] sm:$0xff]  ;;  %v121_v12 = vld [vmem:[%s2531_s1 + $0x18] sm:$0xff]  ;;  %v118_v15 = vld [vmem:[%s2531_s1] sm:$0xff] }
  0x5e   :  { %2105 = vmatprep.subr.mxu0 %v2330_v0  ;;  %294 = vmatprep.subr.mxu1 %v211_v7  ;;  %v120_v13 = vld [vmem:[%s2531_s1 + $0x10] sm:$0xff]  ;;  %v119_v14 = vld [vmem:[%s2531_s1 + $0x8] sm:$0xff]  ;;  %v117_v16 = vld [vmem:[#allocation2] sm:$0x3]  ;;  %s2332_s1 = smov [#allocation14]  }
  0x5f   :  { %2106 = vmatpush3.msra.mxu0 %v124_v3  ;;  %295 = vmatpush1.msra.mxu1 %v210_v8  ;;  %v218_v17 = vld [vmem:[#allocation5 + $0x68] sm:$0xf]  ;;  %v579_v18 = vld [vmem:[#allocation8 + $0x2d8] sm:$0xff]  ;;  %v578_v19 = vld [vmem:[#allocation8 + $0x2d0] sm:$0xff]  ;;  %s1959_s12 = sshll.u32 %s2332_s1, 4  ;;  %s1960_s12 = int_to_ptr.vmem [resolvable:$true] %s1959_s12 }
  0x60   :  { %2107 = vmatprep.subr.mxu0 %v2330_v0  ;;  %296 = vmatprep.subr.mxu1 %v206_v9  ;;  %v573_v20 = vld [vmem:[#allocation8 + $0x2a8] sm:$0xff]  ;;  %v572_v21 = vld [vmem:[#allocation8 + $0x2a0] sm:$0xff]  ;;  %v567_v22 = vld [vmem:[#allocation8 + $0x278] sm:$0xff]  ;;  %s2287_s13 = scalar_lea.vmem %s1960_s12, 32  ;;  %p2292_p8 = scmp.lt.s32.totalorder %s1960_s12, %s1960_s12 }
  0x61   :  { %2108 = vmatpush3.msra.mxu0 %v123_v6  ;;  %297 = vmatpush1.msra.mxu1 %v205_v11  ;;  %v566_v23 = vld [vmem:[#allocation8 + $0x270] sm:$0xff]  ;;  %v561_v24 = vld [vmem:[#allocation8 + $0x248] sm:$0xff]  ;;  %v560_v25 = vld [vmem:[#allocation8 + $0x240] sm:$0xff]  ;;  %p2288_p7 = scmp.ne.s32.totalorder %s1960_s12, %s2287_s13  ;;  %p2293_p9 = scmp.lt.s32.totalorder %s2287_s13, %s2287_s13 }
  0x62   :  { %2109 = vmatprep.subr.mxu0 %v2330_v0  ;;  %1976 = vmatprep.subr.msk.mxu1 %vm131_vm1, %v218_v17  ;;  %v555_v26 = vld [vmem:[#allocation8 + $0x218] sm:$0xff]  ;;  %v554_v27 = vld [vmem:[#allocation8 + $0x210] sm:$0xff]  ;;  %v549_v28 = vld [vmem:[#allocation8 + $0x1e8] sm:$0xff] }
  0x63   :  { %2110 = vmatpush3.msra.mxu0 %v122_v10  ;;  %v548_v29 = vld [vmem:[#allocation8 + $0x1e0] sm:$0xff]  ;;  %v543_v30 = vld [vmem:[#allocation8 + $0x1b8] sm:$0xff]  ;;  %v542_v31 = vld [vmem:[#allocation8 + $0x1b0] sm:$0xff]  ;;  %p2294_p10 = por %p2293_p9, %p2292_p8 }
  0x64   :  { %2111 = vmatprep.subr.mxu0 %v2330_v0  ;;  %v537_v32 = vld [vmem:[#allocation8 + $0x188] sm:$0xff]  ;;  %v536_v33 = vld [vmem:[#allocation8 + $0x180] sm:$0xff]  ;;  %v531_v34 = vld [vmem:[#allocation8 + $0x158] sm:$0xff] }
  0x65   :  { %2112 = vmatpush3.msra.mxu0 %v121_v12  ;;  %v530_v35 = vld [vmem:[#allocation8 + $0x150] sm:$0xff]  ;;  %v525_v36 = vld [vmem:[#allocation8 + $0x128] sm:$0xff]  ;;  %v524_v37 = vld [vmem:[#allocation8 + $0x120] sm:$0xff]  ;;  %p2295_p11 = pnand %p2294_p10, %p2288_p7 }
  0x66   :  { %2113 = vmatprep.subr.mxu0 %v2330_v0  ;;  %v519_v38 = vld [vmem:[#allocation8 + $0xf8] sm:$0xff]  ;;  %v518_v39 = vld [vmem:[#allocation8 + $0xf0] sm:$0xff]  ;;  %v513_v40 = vld [vmem:[#allocation8 + $0xc8] sm:$0xff] }
  0x67   :  { %2114 = vmatpush3.msra.mxu0 %v120_v13  ;;  %v512_v41 = vld [vmem:[#allocation8 + $0xc0] sm:$0xff]  ;;  %v507_v42 = vld [vmem:[#allocation8 + $0x98] sm:$0xff]  ;;  %v506_v43 = vld [vmem:[#allocation8 + $0x90] sm:$0xff] }
  0x68   :  { %2115 = vmatprep.subr.mxu0 %v2330_v0  ;;  %v501_v44 = vld [vmem:[#allocation8 + $0x68] sm:$0xff]  ;;  %v500_v45 = vld [vmem:[#allocation8 + $0x60] sm:$0xff]  ;;  %v495_v46 = vld [vmem:[#allocation8 + $0x38] sm:$0xff] }
  0x69   :  { %2116 = vmatpush3.msra.mxu0 %v119_v14  ;;  %v494_v47 = vld [vmem:[#allocation8 + $0x30] sm:$0xff]  ;;  %v489_v48 = vld [vmem:[#allocation8 + $0x8] sm:$0xff]  ;;  %v488_v49 = vld [vmem:[#allocation8] sm:$0xff] }
  0x6a   :  { %2117 = vmatprep.subr.mxu0 %v2330_v0  ;;  %v675_v50 = vld [vmem:[#allocation8 + $0x5d8] sm:$0xff]  ;;  %v674_v51 = vld [vmem:[#allocation8 + $0x5d0] sm:$0xff]  ;;  %v669_v52 = vld [vmem:[#allocation8 + $0x5a8] sm:$0xff] }
  0x6b   :  { %2118 = vmatpush3.msra.mxu0 %v118_v15  ;;  %v668_v53 = vld [vmem:[#allocation8 + $0x5a0] sm:$0xff]  ;;  %v663_v54 = vld [vmem:[#allocation8 + $0x578] sm:$0xff]  ;;  %v662_v55 = vld [vmem:[#allocation8 + $0x570] sm:$0xff] }
  0x6c   :  { %2120 = vmatmul.mubr.msk.f32.vlgmr.msra.gmra.mxu0 %vm127_vm2, %v117_v16  ;;  %1000 = vmatprep.subr.mxu0 %v579_v18  ;;  %v657_v56 = vld [vmem:[#allocation8 + $0x548] sm:$0xff]  ;;  %v656_v57 = vld [vmem:[#allocation8 + $0x540] sm:$0xff]  ;;  %v651_v58 = vld [vmem:[#allocation8 + $0x518] sm:$0xff] }
  0x6d   :  { %1001 = vmatpush1.msra.mxu0 %v578_v19  ;;  %v650_v59 = vld [vmem:[#allocation8 + $0x510] sm:$0xff]  ;;  %v645_v60 = vld [vmem:[#allocation8 + $0x4e8] sm:$0xff]  ;;  %v644_v61 = vld [vmem:[#allocation8 + $0x4e0] sm:$0xff] }
  0x6e   :  { %1002 = vmatprep.subr.mxu0 %v573_v20  ;;  %v639_v62 = vld [vmem:[#allocation8 + $0x4b8] sm:$0xff]  ;;  %v638_v63 = vld [vmem:[#allocation8 + $0x4b0] sm:$0xff]  ;;  %v633_v1 = vld [vmem:[#allocation8 + $0x488] sm:$0xff] }
  0x6f   :  { %1003 = vmatpush1.msra.mxu0 %v572_v21  ;;  %v632_v2 = vld [vmem:[#allocation8 + $0x480] sm:$0xff]  ;;  %v627_v3 = vld [vmem:[#allocation8 + $0x458] sm:$0xff]  ;;  %v626_v4 = vld [vmem:[#allocation8 + $0x450] sm:$0xff] }
  0x70   :  { %1004 = vmatprep.subr.mxu0 %v567_v22  ;;  %v621_v5 = vld [vmem:[#allocation8 + $0x428] sm:$0xff]  ;;  %v620_v6 = vld [vmem:[#allocation8 + $0x420] sm:$0xff]  ;;  %v615_v7 = vld [vmem:[#allocation8 + $0x3f8] sm:$0xff] }
  0x71   :  { %1005 = vmatpush1.msra.mxu0 %v566_v23  ;;  %v614_v8 = vld [vmem:[#allocation8 + $0x3f0] sm:$0xff]  ;;  %v609_v9 = vld [vmem:[#allocation8 + $0x3c8] sm:$0xff]  ;;  %v217_v10 = vld [vmem:[#allocation5 + $0x60] sm:$0xf] }
  0x72   :  { %1006 = vmatprep.subr.mxu0 %v561_v24  ;;  %v213_v12 = vld [vmem:[#allocation5 + $0x40] sm:$0xff]  ;;  %v212_v13 = vld [vmem:[#allocation5 + $0x38] sm:$0xff]  ;;  %v207_v16 = vld [vmem:[#allocation5 + $0x10] sm:$0xff] }
  0x73   :  { %1007 = vmatpush1.msra.mxu0 %v560_v25  ;;  %v208_v15 = vld [vmem:[#allocation5 + $0x18] sm:$0xff]  ;;  %v219_v17 = vld [vmem:[#allocation5 + $0x70] sm:$0xf]  ;;  %v214_v18 = vld [vmem:[#allocation5 + $0x48] sm:$0xff] }
  0x74   :  { %1008 = vmatprep.subr.mxu0 %v555_v26  ;;  %v209_v19 = vld [vmem:[#allocation5 + $0x20] sm:$0xff]  ;;  %v771_v20 = vld [vmem:[#allocation8 + $0x8d8] sm:$0xff]  ;;  %v770_v21 = vld [vmem:[#allocation8 + $0x8d0] sm:$0xff] }
  0x75   :  { %1009 = vmatpush1.msra.mxu0 %v554_v27  ;;  %v765_v22 = vld [vmem:[#allocation8 + $0x8a8] sm:$0xff]  ;;  %v764_v23 = vld [vmem:[#allocation8 + $0x8a0] sm:$0xff]  ;;  %v759_v24 = vld [vmem:[#allocation8 + $0x878] sm:$0xff] }
  0x76   :  { %1010 = vmatprep.subr.mxu0 %v549_v28  ;;  %v758_v25 = vld [vmem:[#allocation8 + $0x870] sm:$0xff]  ;;  %v753_v26 = vld [vmem:[#allocation8 + $0x848] sm:$0xff]  ;;  %v752_v27 = vld [vmem:[#allocation8 + $0x840] sm:$0xff] }
  0x77   :  { %1011 = vmatpush1.msra.mxu0 %v548_v29  ;;  %v747_v28 = vld [vmem:[#allocation8 + $0x818] sm:$0xff]  ;;  %v746_v29 = vld [vmem:[#allocation8 + $0x810] sm:$0xff] }
  0x78   :  { %1012 = vmatprep.subr.mxu0 %v543_v30  ;;  %v741_v30 = vld [vmem:[#allocation8 + $0x7e8] sm:$0xff] }
  0x79   :  { %1013 = vmatpush1.msra.mxu0 %v542_v31  ;;  %v740_v31 = vld [vmem:[#allocation8 + $0x7e0] sm:$0xff] }
  0x7a   :  { %1014 = vmatprep.subr.mxu0 %v537_v32  ;;  %v735_v32 = vld [vmem:[#allocation8 + $0x7b8] sm:$0xff] }
  0x7b   :  { %1015 = vmatpush1.msra.mxu0 %v536_v33  ;;  %v734_v33 = vld [vmem:[#allocation8 + $0x7b0] sm:$0xff] }
  0x7c   :  { %1016 = vmatprep.subr.mxu0 %v531_v34  ;;  %v729_v34 = vld [vmem:[#allocation8 + $0x788] sm:$0xff] }
  0x7d   :  { %1017 = vmatpush1.msra.mxu0 %v530_v35  ;;  %v728_v35 = vld [vmem:[#allocation8 + $0x780] sm:$0xff] }
  0x7e   :  { %1018 = vmatprep.subr.mxu0 %v525_v36  ;;  %v723_v36 = vld [vmem:[#allocation8 + $0x758] sm:$0xff] }
  0x7f   :  { %1019 = vmatpush1.msra.mxu0 %v524_v37  ;;  %v722_v37 = vld [vmem:[#allocation8 + $0x750] sm:$0xff] }
  0x80   :  { %1020 = vmatprep.subr.mxu0 %v519_v38  ;;  %v717_v38 = vld [vmem:[#allocation8 + $0x728] sm:$0xff] }
  0x81   :  { %1021 = vmatpush1.msra.mxu0 %v518_v39  ;;  %v716_v39 = vld [vmem:[#allocation8 + $0x720] sm:$0xff] }
  0x82   :  { %1022 = vmatprep.subr.mxu0 %v513_v40  ;;  %v711_v40 = vld [vmem:[#allocation8 + $0x6f8] sm:$0xff] }
  0x83   :  { %1023 = vmatpush1.msra.mxu0 %v512_v41  ;;  %v710_v41 = vld [vmem:[#allocation8 + $0x6f0] sm:$0xff] }
  0x84   :  { %1024 = vmatprep.subr.mxu0 %v507_v42  ;;  %v705_v42 = vld [vmem:[#allocation8 + $0x6c8] sm:$0xff] }
  0x85   :  { %1025 = vmatpush1.msra.mxu0 %v506_v43  ;;  %v704_v43 = vld [vmem:[#allocation8 + $0x6c0] sm:$0xff] }
  0x86   :  { %1026 = vmatprep.subr.mxu0 %v501_v44  ;;  %v699_v44 = vld [vmem:[#allocation8 + $0x698] sm:$0xff] }
  0x87   :  { %1027 = vmatpush1.msra.mxu0 %v500_v45  ;;  %v698_v45 = vld [vmem:[#allocation8 + $0x690] sm:$0xff] }
  0x88   :  { %1028 = vmatprep.subr.mxu0 %v495_v46  ;;  %v693_v46 = vld [vmem:[#allocation8 + $0x668] sm:$0xff] }
  0x89   :  { %1029 = vmatpush1.msra.mxu0 %v494_v47  ;;  %v692_v47 = vld [vmem:[#allocation8 + $0x660] sm:$0xff] }
  0x8a   :  { %1030 = vmatprep.subr.mxu0 %v489_v48  ;;  %v687_v48 = vld [vmem:[#allocation8 + $0x638] sm:$0xff] }
  0x8b   :  { %1031 = vmatpush1.msra.mxu0 %v488_v49  ;;  %v686_v49 = vld [vmem:[#allocation8 + $0x630] sm:$0xff] }
  0x8c   :  { %1032 = vmatprep.subr.mxu0 %v675_v50  ;;  %v681_v50 = vld [vmem:[#allocation8 + $0x608] sm:$0xff] }
  0x8d   :  { %1033 = vmatpush2.msra.mxu0 %v674_v51  ;;  %v680_v51 = vld [vmem:[#allocation8 + $0x600] sm:$0xff] }
  0x8e   :  { %1034 = vmatprep.subr.mxu0 %v669_v52  ;;  %v867_v52 = vld [vmem:[#allocation8 + $0xbd8] sm:$0xff] }
  0x8f   :  { %1035 = vmatpush2.msra.mxu0 %v668_v53  ;;  %v866_v53 = vld [vmem:[#allocation8 + $0xbd0] sm:$0xff] }
  0x90   :  { %1036 = vmatprep.subr.mxu0 %v663_v54  ;;  %v861_v54 = vld [vmem:[#allocation8 + $0xba8] sm:$0xff] }
  0x91   :  { %1037 = vmatpush2.msra.mxu0 %v662_v55  ;;  %v860_v55 = vld [vmem:[#allocation8 + $0xba0] sm:$0xff] }
  0x92   :  { %1038 = vmatprep.subr.mxu0 %v657_v56  ;;  %v855_v56 = vld [vmem:[#allocation8 + $0xb78] sm:$0xff] }
  0x93   :  { %1039 = vmatpush2.msra.mxu0 %v656_v57  ;;  %v854_v57 = vld [vmem:[#allocation8 + $0xb70] sm:$0xff] }
  0x94   :  { %1040 = vmatprep.subr.mxu0 %v651_v58  ;;  %v849_v58 = vld [vmem:[#allocation8 + $0xb48] sm:$0xff] }
  0x95   :  { %1041 = vmatpush2.msra.mxu0 %v650_v59  ;;  %v848_v59 = vld [vmem:[#allocation8 + $0xb40] sm:$0xff] }
  0x96   :  { %1042 = vmatprep.subr.mxu0 %v645_v60  ;;  %v843_v60 = vld [vmem:[#allocation8 + $0xb18] sm:$0xff] }
  0x97   :  { %1043 = vmatpush2.msra.mxu0 %v644_v61  ;;  %v842_v61 = vld [vmem:[#allocation8 + $0xb10] sm:$0xff] }
  0x98   :  { %1044 = vmatprep.subr.mxu0 %v639_v62  ;;  %v837_v62 = vld [vmem:[#allocation8 + $0xae8] sm:$0xff] }
  0x99   :  { %1045 = vmatpush2.msra.mxu0 %v638_v63  ;;  %v836_v63 = vld [vmem:[#allocation8 + $0xae0] sm:$0xff] }
  0x9a   :  { %1046 = vmatprep.subr.mxu0 %v633_v1  ;;  %v831_v1 = vld [vmem:[#allocation8 + $0xab8] sm:$0xff] }
  0x9b   :  { %1047 = vmatpush2.msra.mxu0 %v632_v2  ;;  %v830_v2 = vld [vmem:[#allocation8 + $0xab0] sm:$0xff] }
  0x9c   :  { %1048 = vmatprep.subr.mxu0 %v627_v3  ;;  %v825_v3 = vld [vmem:[#allocation8 + $0xa88] sm:$0xff] }
  0x9d   :  { %1049 = vmatpush2.msra.mxu0 %v626_v4  ;;  %v824_v4 = vld [vmem:[#allocation8 + $0xa80] sm:$0xff] }
  0x9e   :  { %1050 = vmatprep.subr.mxu0 %v621_v5  ;;  %v819_v5 = vld [vmem:[#allocation8 + $0xa58] sm:$0xff] }
  0x9f   :  { %1051 = vmatpush2.msra.mxu0 %v620_v6  ;;  %v818_v6 = vld [vmem:[#allocation8 + $0xa50] sm:$0xff] }
  0xa0   :  { %1052 = vmatprep.subr.mxu0 %v615_v7  ;;  %v608_v7 = vld [vmem:[#allocation8 + $0x3c0] sm:$0xff] }
  0xa1   :  { %1053 = vmatpush2.msra.mxu0 %v614_v8  ;;  %v813_v8 = vld [vmem:[#allocation8 + $0xa28] sm:$0xff] }
  0xa2   :  { %1054 = vmatprep.subr.mxu0 %v609_v9  ;;  %v603_v9 = vld [vmem:[#allocation8 + $0x398] sm:$0xff] }
  0xa3   :  { %1055 = vmatpush2.msra.mxu0 %v608_v7  ;;  %v939_v7 = vld [vmem:[#allocation8 + $0xe18] sm:$0xff] }
  0xa4   :  { %1056 = vmatprep.subr.mxu0 %v603_v9  ;;  %v938_v9 = vld [vmem:[#allocation8 + $0xe10] sm:$0xff] }
 0x12c   :  { %v201_v11 = vpop.f32.mrf.mxu0 }
 0x12d   :  { %1975 = vmatmul.mubr.msk.f32.vlgmr.msra.gmra.mxu1 %vm247_vm3, %v201_v11 }
 0x12e   :  { %1977 = vmatpush1.msk.msra.mxu1 %vm131_vm1, %v217_v10  ;;  %v2121_v14 = vpop.f32.mrf.mxu0  ;;  %401 = vmatprep.mubr.f32.mxu1 %v2330_v0  ;;  %v812_v10 = vld [vmem:[#allocation8 + $0xa20] sm:$0xff] }
 0x12f   :  { %365 = vmatprep.subr.mxu1 %v213_v12  ;;  %v807_v12 = vld [vmem:[#allocation8 + $0x9f8] sm:$0xff]  ;;  %v806_v14 = vld [vmem:[#allocation8 + $0x9f0] sm:$0xff] }
 0x130   :  { %366 = vmatpush1.msra.mxu1 %v212_v13  ;;  %v597_v13 = vld [vmem:[#allocation8 + $0x368] sm:$0xff] }
 0x131   :  { %367 = vmatprep.subr.mxu1 %v208_v15  ;;  %v596_v15 = vld [vmem:[#allocation8 + $0x360] sm:$0xff] }
 0x132   :  { %368 = vmatpush1.msra.mxu1 %v207_v16  ;;  %v801_v16 = vld [vmem:[#allocation8 + $0x9c8] sm:$0xff] }
 0x133   :  { %1978 = vmatmul.mubr.msk.f32.vlgmr.msra.gmra.mxu1 %vm247_vm3, %v201_v11  ;;  %2122 = vmatprep.subr.mxu1 %v2330_v0 }
 0x134   :  { %2123 = vmatpush3.msk.msra.mxu1 %vm131_vm1, %v219_v17  ;;  %2128 = vmatprep.mubr.msk.f32.mxu1 %vm2331_vm0, %v2330_v0  ;;  %v591_v17 = vld [vmem:[#allocation8 + $0x338] sm:$0xff] }
 0x135   :  { %2124 = vmatprep.subr.mxu1 %v2330_v0 }
 0x136   :  { %2125 = vmatpush3.msra.mxu1 %v214_v18  ;;  %v800_v18 = vld [vmem:[#allocation8 + $0x9c0] sm:$0xff] }
 0x137   :  { %2126 = vmatprep.subr.mxu1 %v2330_v0 }
 0x138   :  { %2127 = vmatpush3.msra.mxu1 %v209_v19  ;;  %v590_v19 = vld [vmem:[#allocation8 + $0x330] sm:$0xff] }
 0x139   :  { %2129 = vmatmul.mubr.msk.f32.vlgmr.msra.gmra.mxu1 %vm247_vm3, %v201_v11  ;;  %1071 = vmatprep.subr.mxu1 %v771_v20  ;;  %v602_v11 = vld [vmem:[#allocation8 + $0x390] sm:$0xff]  ;;  %v795_v20 = vld [vmem:[#allocation8 + $0x998] sm:$0xff] }
 0x13a   :  { %1072 = vmatpush1.msra.mxu1 %v770_v21  ;;  %1057 = vmatpush2.msra.mxu0 %v602_v11  ;;  %v585_v21 = vld [vmem:[#allocation8 + $0x308] sm:$0xff] }
 0x13b   :  { %1073 = vmatprep.subr.mxu1 %v765_v22  ;;  %1058 = vmatprep.subr.mxu0 %v597_v13  ;;  %v794_v22 = vld [vmem:[#allocation8 + $0x990] sm:$0xff]  ;;  %v933_v11 = vld [vmem:[#allocation8 + $0xde8] sm:$0xff]  ;;  %v932_v13 = vld [vmem:[#allocation8 + $0xde0] sm:$0xff] }
 0x13c   :  { %1074 = vmatpush1.msra.mxu1 %v764_v23  ;;  %1059 = vmatpush2.msra.mxu0 %v596_v15  ;;  %v584_v23 = vld [vmem:[#allocation8 + $0x300] sm:$0xff]  ;;  %v927_v15 = vld [vmem:[#allocation8 + $0xdb8] sm:$0xff] }
 0x13d   :  { %1075 = vmatprep.subr.mxu1 %v759_v24  ;;  %1060 = vmatprep.subr.mxu0 %v591_v17  ;;  %v789_v24 = vld [vmem:[#allocation8 + $0x968] sm:$0xff]  ;;  %v926_v17 = vld [vmem:[#allocation8 + $0xdb0] sm:$0xff] }
 0x13e   :  { %1076 = vmatpush1.msra.mxu1 %v758_v25  ;;  %1061 = vmatpush2.msra.mxu0 %v590_v19  ;;  %v788_v25 = vld [vmem:[#allocation8 + $0x960] sm:$0xff]  ;;  %v921_v19 = vld [vmem:[#allocation8 + $0xd88] sm:$0xff] }
 0x13f   :  { %1077 = vmatprep.subr.mxu1 %v753_v26  ;;  %1062 = vmatprep.subr.mxu0 %v585_v21  ;;  %v963_v26 = vld [vmem:[#allocation8 + $0xed8] sm:$0xff]  ;;  %v920_v21 = vld [vmem:[#allocation8 + $0xd80] sm:$0xff] }
 0x140   :  { %1078 = vmatpush1.msra.mxu1 %v752_v27  ;;  %1063 = vmatpush2.msra.mxu0 %v584_v23  ;;  %v783_v27 = vld [vmem:[#allocation8 + $0x938] sm:$0xff] }
 0x141   :  { %1079 = vmatprep.subr.mxu1 %v747_v28  ;;  %1142 = vmatprep.subr.mxu0 %v963_v26  ;;  %v782_v28 = vld [vmem:[#allocation8 + $0x930] sm:$0xff]  ;;  %v915_v23 = vld [vmem:[#allocation8 + $0xd58] sm:$0xff] }
 0x142   :  { %1080 = vmatpush1.msra.mxu1 %v746_v29  ;;  %v777_v29 = vld [vmem:[#allocation8 + $0x908] sm:$0xff]  ;;  %v914_v26 = vld [vmem:[#allocation8 + $0xd50] sm:$0xff] }
 0x143   :  { %1081 = vmatprep.subr.mxu1 %v741_v30  ;;  %v776_v30 = vld [vmem:[#allocation8 + $0x900] sm:$0xff] }
 0x144   :  { %1082 = vmatpush1.msra.mxu1 %v740_v31  ;;  %v581_v31 = vld [vmem:[#allocation8 + $0x2e8] sm:$0xff] }
 0x145   :  { %1083 = vmatprep.subr.mxu1 %v735_v32  ;;  %v222_v32 = vlaneseq }
 0x146   :  { %1084 = vmatpush1.msra.mxu1 %v734_v33 }
 0x147   :  { %1085 = vmatprep.subr.mxu1 %v729_v34  ;;  %v2453_v33 = vshrl.u32 %v222_v32, 7  ;;  %v903_v32 = vld [vmem:[#allocation8 + $0xcf8] sm:$0xff] }
 0x148   :  { %1086 = vmatpush1.msra.mxu1 %v728_v35  ;;  %v2456_v35 = vld [vmem:[#allocation7] sm:$0x1f] }
 0x149   :  { %1087 = vmatprep.subr.mxu1 %v723_v36  ;;  %v224_v34 = vsub.s32 0, %v2453_v33  ;;  %v228_v36 = vsub.s32 1, %v2453_v33 }
 0x14a   :  { %1088 = vmatpush1.msra.mxu1 %v722_v37 }
 0x14b   :  { %1089 = vmatprep.subr.mxu1 %v717_v38  ;;  %v225_v37 = vrot.slane %v2456_v35, %v224_v34  ;;  %v229_v38 = vrot.slane %v2456_v35, %v228_v36 }
 0x14c   :  { %1090 = vmatpush1.msra.mxu1 %v716_v39  ;;  %v232_v39 = vsub.s32 2, %v2453_v33 }
 0x14d   :  { %1091 = vmatprep.subr.mxu1 %v711_v40 }
 0x14e   :  { %1092 = vmatpush1.msra.mxu1 %v710_v41 }
 0x14f   :  { %1093 = vmatprep.subr.mxu1 %v705_v42  ;;  %v236_v42 = vsub.s32 3, %v2453_v33 }
 0x150   :  { %1094 = vmatpush1.msra.mxu1 %v704_v43 }
 0x151   :  { %1095 = vmatprep.subr.mxu1 %v699_v44 }
 0x152   :  { %1096 = vmatpush1.msra.mxu1 %v698_v45  ;;  %v233_v45 = vrot.slane %v2456_v35, %v232_v39 }
 0x153   :  { %1097 = vmatprep.subr.mxu1 %v693_v46 }
 0x154   :  { %1098 = vmatpush1.msra.mxu1 %v692_v47 }
 0x155   :  { %1099 = vmatprep.subr.mxu1 %v687_v48  ;;  %v237_v48 = vrot.slane %v2456_v35, %v236_v42 }
 0x156   :  { %1100 = vmatpush1.msra.mxu1 %v686_v49 }
 0x157   :  { %1101 = vmatprep.subr.mxu1 %v681_v50 }
 0x158   :  { %1102 = vmatpush1.msra.mxu1 %v680_v51 }
 0x159   :  { %1103 = vmatprep.subr.mxu1 %v867_v52 }
 0x15a   :  { %1104 = vmatpush2.msra.mxu1 %v866_v53 }
 0x15b   :  { %1105 = vmatprep.subr.mxu1 %v861_v54  ;;  %v962_v54 = vld [vmem:[#allocation8 + $0xed0] sm:$0xff] }
 0x15c   :  { %1106 = vmatpush2.msra.mxu1 %v860_v55 }
 0x15d   :  { %1107 = vmatprep.subr.mxu1 %v855_v56  ;;  %v957_v56 = vld [vmem:[#allocation8 + $0xea8] sm:$0xff] }
 0x15e   :  { %1108 = vmatpush2.msra.mxu1 %v854_v57 }
 0x15f   :  { %1109 = vmatprep.subr.mxu1 %v849_v58  ;;  %v956_v58 = vld [vmem:[#allocation8 + $0xea0] sm:$0xff] }
 0x160   :  { %1110 = vmatpush2.msra.mxu1 %v848_v59 }
 0x161   :  { %1111 = vmatprep.subr.mxu1 %v843_v60  ;;  %v951_v60 = vld [vmem:[#allocation8 + $0xe78] sm:$0xff] }
 0x162   :  { %1112 = vmatpush2.msra.mxu1 %v842_v61 }
 0x163   :  { %1113 = vmatprep.subr.mxu1 %v837_v62  ;;  %v950_v62 = vld [vmem:[#allocation8 + $0xe70] sm:$0xff] }
 0x164   :  { %1114 = vmatpush2.msra.mxu1 %v836_v63 }
 0x165   :  { %1115 = vmatprep.subr.mxu1 %v831_v1  ;;  %v945_v1 = vld [vmem:[#allocation8 + $0xe48] sm:$0xff] }
 0x166   :  { %1116 = vmatpush2.msra.mxu1 %v830_v2 }
 0x167   :  { %1117 = vmatprep.subr.mxu1 %v825_v3 }
 0x168   :  { %1118 = vmatpush2.msra.mxu1 %v824_v4  ;;  %v580_v4 = vld [vmem:[#allocation8 + $0x2e0] sm:$0xff] }
 0x169   :  { %1119 = vmatprep.subr.mxu1 %v819_v5  ;;  %v944_v5 = vld [vmem:[#allocation8 + $0xe40] sm:$0xff] }
 0x16a   :  { %1120 = vmatpush2.msra.mxu1 %v818_v6  ;;  %v575_v6 = vld [vmem:[#allocation8 + $0x2b8] sm:$0xff] }
 0x16b   :  { %1121 = vmatprep.subr.mxu1 %v813_v8  ;;  %v574_v8 = vld [vmem:[#allocation8 + $0x2b0] sm:$0xff] }
 0x16c   :  { %1122 = vmatpush2.msra.mxu1 %v812_v10  ;;  %v569_v10 = vld [vmem:[#allocation8 + $0x288] sm:$0xff] }
 0x16d   :  { %1123 = vmatprep.subr.mxu1 %v807_v12  ;;  %v568_v12 = vld [vmem:[#allocation8 + $0x280] sm:$0xff] }
 0x16e   :  { %1124 = vmatpush2.msra.mxu1 %v806_v14  ;;  %v563_v14 = vld [vmem:[#allocation8 + $0x258] sm:$0xff] }
 0x16f   :  { %1125 = vmatprep.subr.mxu1 %v801_v16  ;;  %v562_v16 = vld [vmem:[#allocation8 + $0x250] sm:$0xff] }
 0x170   :  { %1126 = vmatpush2.msra.mxu1 %v800_v18  ;;  %v557_v18 = vld [vmem:[#allocation8 + $0x228] sm:$0xff] }
 0x171   :  { %1127 = vmatprep.subr.mxu1 %v795_v20  ;;  %v556_v20 = vld [vmem:[#allocation8 + $0x220] sm:$0xff] }
 0x172   :  { %1128 = vmatpush2.msra.mxu1 %v794_v22  ;;  %v551_v22 = vld [vmem:[#allocation8 + $0x1f8] sm:$0xff] }
 0x173   :  { %1129 = vmatprep.subr.mxu1 %v789_v24  ;;  %v550_v24 = vld [vmem:[#allocation8 + $0x1f0] sm:$0xff] }
 0x174   :  { %1130 = vmatpush2.msra.mxu1 %v788_v25  ;;  %v240_v25 = vsub.s32 4, %v2453_v33 }
 0x175   :  { %1131 = vmatprep.subr.mxu1 %v783_v27  ;;  %v545_v27 = vld [vmem:[#allocation8 + $0x1c8] sm:$0xff] }
 0x176   :  { %1132 = vmatpush2.msra.mxu1 %v782_v28  ;;  %v909_v28 = vld [vmem:[#allocation8 + $0xd28] sm:$0xff] }
 0x177   :  { %1133 = vmatprep.subr.mxu1 %v777_v29  ;;  %v544_v29 = vld [vmem:[#allocation8 + $0x1c0] sm:$0xff] }
 0x178   :  { %1134 = vmatpush2.msra.mxu1 %v776_v30  ;;  %v908_v30 = vld [vmem:[#allocation8 + $0xd20] sm:$0xff] }
 0x179   :  { %1213 = vmatprep.subr.mxu1 %v581_v31  ;;  %v539_v31 = vld [vmem:[#allocation8 + $0x198] sm:$0xff] }
 0x1ed   :  { %v332_v40 = vpop.f32.mrf.mxu1 }
 0x1ee   :  { %v333_v41 = vadd.f32 %v332_v40, %v225_v37  ;;  %v538_v37 = vld [vmem:[#allocation8 + $0x190] sm:$0xff] }
 0x1ef   :  { %v334_v43 = vpop.f32.mrf.mxu1  ;;  %v902_v40 = vld [vmem:[#allocation8 + $0xcf0] sm:$0xff] }
 0x1f0   :  { %v335_v44 = vadd.f32 %v334_v43, %v229_v38  ;;  %v478_v46 = vmax.f32 %v333_v41, 0.0  ;;  %v241_v38 = vrot.slane %v2456_v35, %v240_v25  ;;  %v533_v41 = vld [vmem:[#allocation8 + $0x168] sm:$0xff]  ;;  %v890_v35 = vld [vmem:[#allocation8 + $0xc90] sm:$0xff] }
 0x1f1   :  { %v897_v43 = vld [vmem:[#allocation8 + $0xcc8] sm:$0xff] }
 0x1f2   :  { %v479_v47 = vmax.f32 %v335_v44, 0.0  ;;  %v2475_v52 = vmin.f32 %v478_v46, 6.0  ;;  %v532_v44 = vld [vmem:[#allocation8 + $0x160] sm:$0xff]  ;;  %v527_v46 = vld [vmem:[#allocation8 + $0x138] sm:$0xff] }
 0x1f3   :  { %v403_v49 = vpop.f32.mrf.mxu1 }
 0x1f4   :  { %v2473_v50 = vmin.f32 %v479_v47, 6.0  ;;  %v404_v51 = vadd.f32 %v403_v49, %v233_v45  ;;  %v896_v45 = vld [vmem:[#allocation8 + $0xcc0] sm:$0xff]  ;;  %v891_v47 = vld [vmem:[#allocation8 + $0xc98] sm:$0xff] }
 0x1f5   :  { %v405_v53 = vpop.f32.mrf.mxu1 }
 0x1f6   :  { %v406_v55 = vadd.f32 %v405_v53, %v237_v48  ;;  %1064 = vmatprep.mubr.f32.mxu0 %v2473_v50  ;;  %v480_v57 = vmax.f32 %v404_v51, 0.0  ;;  %v526_v48 = vld [vmem:[#allocation8 + $0x130] sm:$0xff]  ;;  %v521_v51 = vld [vmem:[#allocation8 + $0x108] sm:$0xff] }
 0x1f7   :  { %1065 = vmatmul.mubr.f32.vlgmr.msra.gmra.mxu0 %v2475_v52  ;;  %v885_v53 = vld [vmem:[#allocation8 + $0xc68] sm:$0xff] }
 0x1f8   :  { %v481_v59 = vmax.f32 %v406_v55, 0.0  ;;  %1143 = vmatpush1.msra.mxu0 %v962_v54  ;;  %1206 = vmatprep.mubr.f32.mxu0 %v2330_v0  ;;  %v2484_v2 = vmin.f32 %v480_v57, 6.0  ;;  %v520_v54 = vld [vmem:[#allocation8 + $0x100] sm:$0xff]  ;;  %v879_v57 = vld [vmem:[#allocation8 + $0xc38] sm:$0xff] }
 0x1f9   :  { %v2480_v61 = vpop.f32.mrf.mxu1  ;;  %1144 = vmatprep.subr.mxu0 %v957_v56  ;;  %v884_v55 = vld [vmem:[#allocation8 + $0xc60] sm:$0xff]  ;;  %v515_v56 = vld [vmem:[#allocation8 + $0xd8] sm:$0xff] }
 0x1fa   :  { %v2482_v63 = vmin.f32 %v481_v59, 6.0  ;;  %1145 = vmatpush1.msra.mxu0 %v956_v58  ;;  %v475_v49 = vadd.f32 %v2480_v61, %v241_v38  ;;  %v514_v58 = vld [vmem:[#allocation8 + $0xd0] sm:$0xff]  ;;  %v509_v61 = vld [vmem:[#allocation8 + $0xa8] sm:$0xff]  ;;  %v736_v38 = vld [vmem:[#allocation8 + $0x7c0] sm:$0xff] }
 0x1fb   :  { %v2130_v3 = vpop.f32.mrf.mxu1  ;;  %1146 = vmatprep.subr.mxu0 %v951_v60  ;;  %v878_v60 = vld [vmem:[#allocation8 + $0xc30] sm:$0xff] }
 0x1fc   :  { %1135 = vmatprep.mubr.f32.mxu1 %v2482_v63  ;;  %1147 = vmatpush1.msra.mxu0 %v950_v62  ;;  %v482_v59 = vmax.f32 %v475_v49, 0.0  ;;  %v873_v62 = vld [vmem:[#allocation8 + $0xc08] sm:$0xff]  ;;  %v872_v3 = vld [vmem:[#allocation8 + $0xc00] sm:$0xff] }
 0x1fd   :  { %1136 = vmatmul.mubr.f32.vlgmr.msra.gmra.mxu1 %v2484_v2  ;;  %1148 = vmatprep.subr.mxu0 %v945_v1  ;;  %v508_v1 = vld [vmem:[#allocation8 + $0xa0] sm:$0xff] }
 0x1fe   :  { %1214 = vmatpush1.msra.mxu1 %v580_v4  ;;  %1149 = vmatpush1.msra.mxu0 %v944_v5  ;;  %v503_v4 = vld [vmem:[#allocation8 + $0x78] sm:$0xff]  ;;  %v502_v5 = vld [vmem:[#allocation8 + $0x70] sm:$0xff]  ;;  %v640_v49 = vld [vmem:[#allocation8 + $0x4c0] sm:$0xff] }
 0x1ff   :  { %1215 = vmatprep.subr.mxu1 %v575_v6  ;;  %1277 = vmatprep.mubr.f32.mxu1 %v2473_v50  ;;  %v2494_v6 = vmin.f32 %v482_v59, 6.0  ;;  %v707_v59 = vld [vmem:[#allocation8 + $0x6d8] sm:$0xff] }
 0x200   :  { %1150 = vmatprep.subr.mxu0 %v939_v7  ;;  %1216 = vmatpush1.msra.mxu1 %v574_v8  ;;  %v773_v7 = vld [vmem:[#allocation8 + $0x8e8] sm:$0xff] }
 0x201   :  { %1151 = vmatpush1.msra.mxu0 %v938_v9  ;;  %1217 = vmatprep.subr.mxu1 %v569_v10  ;;  %v497_v8 = vld [vmem:[#allocation8 + $0x48] sm:$0xff]  ;;  %v772_v9 = vld [vmem:[#allocation8 + $0x8e0] sm:$0xff] }
 0x202   :  { %1152 = vmatprep.subr.mxu0 %v933_v11  ;;  %1218 = vmatpush1.msra.mxu1 %v568_v12  ;;  %v496_v10 = vld [vmem:[#allocation8 + $0x40] sm:$0xff]  ;;  %v767_v11 = vld [vmem:[#allocation8 + $0x8b8] sm:$0xff] }
 0x203   :  { %1153 = vmatpush1.msra.mxu0 %v932_v13  ;;  %1219 = vmatprep.subr.mxu1 %v563_v14  ;;  %v491_v12 = vld [vmem:[#allocation8 + $0x18] sm:$0xff]  ;;  %v766_v13 = vld [vmem:[#allocation8 + $0x8b0] sm:$0xff] }
 0x204   :  { %1154 = vmatprep.subr.mxu0 %v927_v15  ;;  %1220 = vmatpush1.msra.mxu1 %v562_v16  ;;  %v490_v14 = vld [vmem:[#allocation8 + $0x10] sm:$0xff]  ;;  %v761_v15 = vld [vmem:[#allocation8 + $0x888] sm:$0xff] }
 0x205   :  { %1155 = vmatpush1.msra.mxu0 %v926_v17  ;;  %1221 = vmatprep.subr.mxu1 %v557_v18  ;;  %v677_v16 = vld [vmem:[#allocation8 + $0x5e8] sm:$0xff]  ;;  %v760_v17 = vld [vmem:[#allocation8 + $0x880] sm:$0xff] }
 0x206   :  { %1156 = vmatprep.subr.mxu0 %v921_v19  ;;  %1222 = vmatpush1.msra.mxu1 %v556_v20  ;;  %v676_v18 = vld [vmem:[#allocation8 + $0x5e0] sm:$0xff]  ;;  %v755_v19 = vld [vmem:[#allocation8 + $0x858] sm:$0xff] }
 0x207   :  { %1157 = vmatpush1.msra.mxu0 %v920_v21  ;;  %1223 = vmatprep.subr.mxu1 %v551_v22  ;;  %v671_v20 = vld [vmem:[#allocation8 + $0x5b8] sm:$0xff]  ;;  %v754_v21 = vld [vmem:[#allocation8 + $0x850] sm:$0xff] }
 0x208   :  { %1158 = vmatprep.subr.mxu0 %v915_v23  ;;  %1224 = vmatpush1.msra.mxu1 %v550_v24  ;;  %v670_v22 = vld [vmem:[#allocation8 + $0x5b0] sm:$0xff]  ;;  %v749_v23 = vld [vmem:[#allocation8 + $0x828] sm:$0xff] }
 0x209   :  { %1159 = vmatpush1.msra.mxu0 %v914_v26  ;;  %1225 = vmatprep.subr.mxu1 %v545_v27  ;;  %v665_v24 = vld [vmem:[#allocation8 + $0x588] sm:$0xff]  ;;  %v748_v26 = vld [vmem:[#allocation8 + $0x820] sm:$0xff] }
 0x20a   :  { %1160 = vmatprep.subr.mxu0 %v909_v28  ;;  %1226 = vmatpush1.msra.mxu1 %v544_v29  ;;  %v664_v27 = vld [vmem:[#allocation8 + $0x580] sm:$0xff]  ;;  %v743_v28 = vld [vmem:[#allocation8 + $0x7f8] sm:$0xff] }
 0x20b   :  { %1161 = vmatpush1.msra.mxu0 %v908_v30  ;;  %1227 = vmatprep.subr.mxu1 %v539_v31  ;;  %v659_v29 = vld [vmem:[#allocation8 + $0x558] sm:$0xff]  ;;  %v742_v30 = vld [vmem:[#allocation8 + $0x7f0] sm:$0xff] }
 0x20c   :  { %1162 = vmatprep.subr.mxu0 %v903_v32  ;;  %1228 = vmatpush1.msra.mxu1 %v538_v37  ;;  %v658_v31 = vld [vmem:[#allocation8 + $0x550] sm:$0xff]  ;;  %v737_v32 = vld [vmem:[#allocation8 + $0x7c8] sm:$0xff] }
 0x20d   :  { %1163 = vmatpush1.msra.mxu0 %v902_v40  ;;  %1229 = vmatprep.subr.mxu1 %v533_v41  ;;  %v653_v37 = vld [vmem:[#allocation8 + $0x528] sm:$0xff]  ;;  %v652_v40 = vld [vmem:[#allocation8 + $0x520] sm:$0xff]  ;;  %v731_v41 = vld [vmem:[#allocation8 + $0x798] sm:$0xff] }
 0x20e   :  { %1164 = vmatprep.subr.mxu0 %v897_v43  ;;  %1230 = vmatpush1.msra.mxu1 %v532_v44  ;;  %v647_v43 = vld [vmem:[#allocation8 + $0x4f8] sm:$0xff]  ;;  %v730_v44 = vld [vmem:[#allocation8 + $0x790] sm:$0xff] }
 0x20f   :  { %1165 = vmatpush1.msra.mxu0 %v896_v45  ;;  %1231 = vmatprep.subr.mxu1 %v527_v46  ;;  %v646_v45 = vld [vmem:[#allocation8 + $0x4f0] sm:$0xff]  ;;  %v725_v46 = vld [vmem:[#allocation8 + $0x768] sm:$0xff] }
 0x210   :  { %1166 = vmatprep.subr.mxu0 %v891_v47  ;;  %1232 = vmatpush1.msra.mxu1 %v526_v48  ;;  %v641_v47 = vld [vmem:[#allocation8 + $0x4c8] sm:$0xff]  ;;  %v724_v48 = vld [vmem:[#allocation8 + $0x760] sm:$0xff] }
 0x211   :  { %1167 = vmatpush1.msra.mxu0 %v890_v35  ;;  %1233 = vmatprep.subr.mxu1 %v521_v51  ;;  %v719_v35 = vld [vmem:[#allocation8 + $0x738] sm:$0xff] }
 0x212   :  { %1168 = vmatprep.subr.mxu0 %v885_v53  ;;  %1234 = vmatpush1.msra.mxu1 %v520_v54  ;;  %v635_v51 = vld [vmem:[#allocation8 + $0x498] sm:$0xff]  ;;  %v718_v53 = vld [vmem:[#allocation8 + $0x730] sm:$0xff] }
 0x213   :  { %1169 = vmatpush1.msra.mxu0 %v884_v55  ;;  %1235 = vmatprep.subr.mxu1 %v515_v56  ;;  %v634_v54 = vld [vmem:[#allocation8 + $0x490] sm:$0xff]  ;;  %v713_v55 = vld [vmem:[#allocation8 + $0x708] sm:$0xff] }
 0x214   :  { %1170 = vmatprep.subr.mxu0 %v879_v57  ;;  %1236 = vmatpush1.msra.mxu1 %v514_v58  ;;  %v629_v56 = vld [vmem:[#allocation8 + $0x468] sm:$0xff]  ;;  %v712_v57 = vld [vmem:[#allocation8 + $0x700] sm:$0xff] }
 0x215   :  { %1171 = vmatpush1.msra.mxu0 %v878_v60  ;;  %1237 = vmatprep.subr.mxu1 %v509_v61  ;;  %v628_v58 = vld [vmem:[#allocation8 + $0x460] sm:$0xff]  ;;  %v623_v60 = vld [vmem:[#allocation8 + $0x438] sm:$0xff]  ;;  %v706_v61 = vld [vmem:[#allocation8 + $0x6d0] sm:$0xff] }
 0x216   :  { %1172 = vmatprep.subr.mxu0 %v873_v62  ;;  %1238 = vmatpush1.msra.mxu1 %v508_v1  ;;  %v622_v62 = vld [vmem:[#allocation8 + $0x430] sm:$0xff]  ;;  %v701_v1 = vld [vmem:[#allocation8 + $0x6a8] sm:$0xff] }
 0x217   :  { %1173 = vmatpush1.msra.mxu0 %v872_v3  ;;  %1239 = vmatprep.subr.mxu1 %v503_v4  ;;  %v617_v3 = vld [vmem:[#allocation8 + $0x408] sm:$0xff]  ;;  %v700_v4 = vld [vmem:[#allocation8 + $0x6a0] sm:$0xff] }
 0x218   :  { %1207 = vmatmul.mubr.f32.vlgmr.msra.gmra.mxu0 %v2494_v6  ;;  %1240 = vmatpush1.msra.mxu1 %v502_v5  ;;  %v616_v5 = vld [vmem:[#allocation8 + $0x400] sm:$0xff] }
 0x219   :  { %1284 = vmatprep.subr.mxu0 %v773_v7  ;;  %1241 = vmatprep.subr.mxu1 %v497_v8  ;;  %v695_v7 = vld [vmem:[#allocation8 + $0x678] sm:$0xff] }
 0x21a   :  { %1285 = vmatpush1.msra.mxu0 %v772_v9  ;;  %1348 = vmatprep.mubr.f32.mxu0 %v2482_v63  ;;  %v611_v8 = vld [vmem:[#allocation8 + $0x3d8] sm:$0xff]  ;;  %v694_v9 = vld [vmem:[#allocation8 + $0x670] sm:$0xff] }
 0x21b   :  { %1242 = vmatpush1.msra.mxu1 %v496_v10  ;;  %1286 = vmatprep.subr.mxu0 %v767_v11  ;;  %v610_v10 = vld [vmem:[#allocation8 + $0x3d0] sm:$0xff]  ;;  %v689_v11 = vld [vmem:[#allocation8 + $0x648] sm:$0xff] }
 0x21c   :  { %1243 = vmatprep.subr.mxu1 %v491_v12  ;;  %1287 = vmatpush1.msra.mxu0 %v766_v13  ;;  %v605_v12 = vld [vmem:[#allocation8 + $0x3a8] sm:$0xff]  ;;  %v688_v13 = vld [vmem:[#allocation8 + $0x640] sm:$0xff] }
 0x21d   :  { %1244 = vmatpush1.msra.mxu1 %v490_v14  ;;  %1288 = vmatprep.subr.mxu0 %v761_v15  ;;  %v604_v14 = vld [vmem:[#allocation8 + $0x3a0] sm:$0xff]  ;;  %v683_v15 = vld [vmem:[#allocation8 + $0x618] sm:$0xff] }
 0x21e   :  { %1245 = vmatprep.subr.mxu1 %v677_v16  ;;  %1289 = vmatpush1.msra.mxu0 %v760_v17  ;;  %v599_v16 = vld [vmem:[#allocation8 + $0x378] sm:$0xff]  ;;  %v682_v17 = vld [vmem:[#allocation8 + $0x610] sm:$0xff] }
 0x21f   :  { %1246 = vmatpush2.msra.mxu1 %v676_v18  ;;  %1290 = vmatprep.subr.mxu0 %v755_v19  ;;  %v598_v18 = vld [vmem:[#allocation8 + $0x370] sm:$0xff]  ;;  %v869_v19 = vld [vmem:[#allocation8 + $0xbe8] sm:$0xff] }
 0x220   :  { %1247 = vmatprep.subr.mxu1 %v671_v20  ;;  %1291 = vmatpush1.msra.mxu0 %v754_v21  ;;  %v593_v20 = vld [vmem:[#allocation8 + $0x348] sm:$0xff]  ;;  %v868_v21 = vld [vmem:[#allocation8 + $0xbe0] sm:$0xff] }
 0x221   :  { %1248 = vmatpush2.msra.mxu1 %v670_v22  ;;  %1292 = vmatprep.subr.mxu0 %v749_v23  ;;  %v592_v22 = vld [vmem:[#allocation8 + $0x340] sm:$0xff]  ;;  %v863_v23 = vld [vmem:[#allocation8 + $0xbb8] sm:$0xff] }
 0x222   :  { %1249 = vmatprep.subr.mxu1 %v665_v24  ;;  %1293 = vmatpush1.msra.mxu0 %v748_v26  ;;  %v587_v24 = vld [vmem:[#allocation8 + $0x318] sm:$0xff]  ;;  %v862_v26 = vld [vmem:[#allocation8 + $0xbb0] sm:$0xff] }
 0x223   :  { %1250 = vmatpush2.msra.mxu1 %v664_v27  ;;  %1294 = vmatprep.subr.mxu0 %v743_v28  ;;  %v586_v27 = vld [vmem:[#allocation8 + $0x310] sm:$0xff]  ;;  %v857_v28 = vld [vmem:[#allocation8 + $0xb88] sm:$0xff] }
 0x224   :  { %1251 = vmatprep.subr.mxu1 %v659_v29  ;;  %1295 = vmatpush1.msra.mxu0 %v742_v30  ;;  %v856_v29 = vld [vmem:[#allocation8 + $0xb80] sm:$0xff]  ;;  %v965_v30 = vld [vmem:[#allocation8 + $0xee8] sm:$0xff] }
 0x225   :  { %1252 = vmatpush2.msra.mxu1 %v658_v31  ;;  %1296 = vmatprep.subr.mxu0 %v737_v32  ;;  %v851_v31 = vld [vmem:[#allocation8 + $0xb58] sm:$0xff]  ;;  %v964_v32 = vld [vmem:[#allocation8 + $0xee0] sm:$0xff] }
 0x226   :  { %1253 = vmatprep.subr.mxu1 %v653_v37  ;;  %1297 = vmatpush1.msra.mxu0 %v736_v38  ;;  %v850_v37 = vld [vmem:[#allocation8 + $0xb50] sm:$0xff]  ;;  %v959_v38 = vld [vmem:[#allocation8 + $0xeb8] sm:$0xff] }
 0x227   :  { %1254 = vmatpush2.msra.mxu1 %v652_v40  ;;  %1298 = vmatprep.subr.mxu0 %v731_v41  ;;  %v845_v40 = vld [vmem:[#allocation8 + $0xb28] sm:$0xff]  ;;  %v958_v41 = vld [vmem:[#allocation8 + $0xeb0] sm:$0xff] }
 0x228   :  { %1255 = vmatprep.subr.mxu1 %v647_v43  ;;  %1299 = vmatpush1.msra.mxu0 %v730_v44  ;;  %v844_v43 = vld [vmem:[#allocation8 + $0xb20] sm:$0xff]  ;;  %v953_v44 = vld [vmem:[#allocation8 + $0xe88] sm:$0xff] }
 0x229   :  { %1256 = vmatpush2.msra.mxu1 %v646_v45  ;;  %1300 = vmatprep.subr.mxu0 %v725_v46  ;;  %v839_v45 = vld [vmem:[#allocation8 + $0xaf8] sm:$0xff]  ;;  %v952_v46 = vld [vmem:[#allocation8 + $0xe80] sm:$0xff] }
 0x22a   :  { %1257 = vmatprep.subr.mxu1 %v641_v47  ;;  %1301 = vmatpush1.msra.mxu0 %v724_v48  ;;  %v838_v47 = vld [vmem:[#allocation8 + $0xaf0] sm:$0xff]  ;;  %v947_v48 = vld [vmem:[#allocation8 + $0xe58] sm:$0xff] }
 0x22b   :  { %1258 = vmatpush2.msra.mxu1 %v640_v49  ;;  %1302 = vmatprep.subr.mxu0 %v719_v35  ;;  %v833_v49 = vld [vmem:[#allocation8 + $0xac8] sm:$0xff]  ;;  %v946_v35 = vld [vmem:[#allocation8 + $0xe50] sm:$0xff] }
 0x22c   :  { %1259 = vmatprep.subr.mxu1 %v635_v51  ;;  %1303 = vmatpush1.msra.mxu0 %v718_v53  ;;  %v832_v51 = vld [vmem:[#allocation8 + $0xac0] sm:$0xff]  ;;  %v941_v53 = vld [vmem:[#allocation8 + $0xe28] sm:$0xff] }
 0x22d   :  { %1260 = vmatpush2.msra.mxu1 %v634_v54  ;;  %1304 = vmatprep.subr.mxu0 %v713_v55  ;;  %v827_v54 = vld [vmem:[#allocation8 + $0xa98] sm:$0xff]  ;;  %v940_v55 = vld [vmem:[#allocation8 + $0xe20] sm:$0xff] }
 0x22e   :  { %1261 = vmatprep.subr.mxu1 %v629_v56  ;;  %1305 = vmatpush1.msra.mxu0 %v712_v57  ;;  %v826_v56 = vld [vmem:[#allocation8 + $0xa90] sm:$0xff]  ;;  %v935_v57 = vld [vmem:[#allocation8 + $0xdf8] sm:$0xff] }
 0x22f   :  { %1262 = vmatpush2.msra.mxu1 %v628_v58  ;;  %1306 = vmatprep.subr.mxu0 %v707_v59  ;;  %v821_v58 = vld [vmem:[#allocation8 + $0xa68] sm:$0xff]  ;;  %v934_v59 = vld [vmem:[#allocation8 + $0xdf0] sm:$0xff] }
 0x230   :  { %1263 = vmatprep.subr.mxu1 %v623_v60  ;;  %1307 = vmatpush1.msra.mxu0 %v706_v61  ;;  %v820_v60 = vld [vmem:[#allocation8 + $0xa60] sm:$0xff]  ;;  %v929_v61 = vld [vmem:[#allocation8 + $0xdc8] sm:$0xff] }
 0x231   :  { %1264 = vmatpush2.msra.mxu1 %v622_v62  ;;  %1308 = vmatprep.subr.mxu0 %v701_v1  ;;  %v815_v62 = vld [vmem:[#allocation8 + $0xa38] sm:$0xff]  ;;  %v928_v1 = vld [vmem:[#allocation8 + $0xdc0] sm:$0xff] }
 0x232   :  { %1265 = vmatprep.subr.mxu1 %v617_v3  ;;  %1309 = vmatpush1.msra.mxu0 %v700_v4  ;;  %v814_v3 = vld [vmem:[#allocation8 + $0xa30] sm:$0xff]  ;;  %v923_v4 = vld [vmem:[#allocation8 + $0xd98] sm:$0xff] }
 0x233   :  { %1266 = vmatpush2.msra.mxu1 %v616_v5  ;;  %1310 = vmatprep.subr.mxu0 %v695_v7  ;;  %v809_v5 = vld [vmem:[#allocation8 + $0xa08] sm:$0xff]  ;;  %v922_v7 = vld [vmem:[#allocation8 + $0xd90] sm:$0xff] }
 0x234   :  { %1267 = vmatprep.subr.mxu1 %v611_v8  ;;  %1311 = vmatpush1.msra.mxu0 %v694_v9  ;;  %v808_v8 = vld [vmem:[#allocation8 + $0xa00] sm:$0xff]  ;;  %v917_v9 = vld [vmem:[#allocation8 + $0xd68] sm:$0xff] }
 0x235   :  { %1268 = vmatpush2.msra.mxu1 %v610_v10  ;;  %1312 = vmatprep.subr.mxu0 %v689_v11  ;;  %v803_v10 = vld [vmem:[#allocation8 + $0x9d8] sm:$0xff]  ;;  %v916_v11 = vld [vmem:[#allocation8 + $0xd60] sm:$0xff] }
 0x236   :  { %1269 = vmatprep.subr.mxu1 %v605_v12  ;;  %1313 = vmatpush1.msra.mxu0 %v688_v13  ;;  %v802_v12 = vld [vmem:[#allocation8 + $0x9d0] sm:$0xff]  ;;  %v911_v13 = vld [vmem:[#allocation8 + $0xd38] sm:$0xff] }
 0x237   :  { %1270 = vmatpush2.msra.mxu1 %v604_v14  ;;  %1314 = vmatprep.subr.mxu0 %v683_v15  ;;  %v797_v14 = vld [vmem:[#allocation8 + $0x9a8] sm:$0xff]  ;;  %v910_v15 = vld [vmem:[#allocation8 + $0xd30] sm:$0xff] }
 0x238   :  { %1271 = vmatprep.subr.mxu1 %v599_v16  ;;  %1315 = vmatpush1.msra.mxu0 %v682_v17  ;;  %v796_v16 = vld [vmem:[#allocation8 + $0x9a0] sm:$0xff]  ;;  %v905_v17 = vld [vmem:[#allocation8 + $0xd08] sm:$0xff] }
 0x239   :  { %1272 = vmatpush2.msra.mxu1 %v598_v18  ;;  %1316 = vmatprep.subr.mxu0 %v869_v19  ;;  %v791_v18 = vld [vmem:[#allocation8 + $0x978] sm:$0xff]  ;;  %v904_v19 = vld [vmem:[#allocation8 + $0xd00] sm:$0xff] }
 0x23a   :  { %1273 = vmatprep.subr.mxu1 %v593_v20  ;;  %1317 = vmatpush2.msra.mxu0 %v868_v21  ;;  %v790_v20 = vld [vmem:[#allocation8 + $0x970] sm:$0xff]  ;;  %v899_v21 = vld [vmem:[#allocation8 + $0xcd8] sm:$0xff] }
 0x23b   :  { %1274 = vmatpush2.msra.mxu1 %v592_v22  ;;  %1318 = vmatprep.subr.mxu0 %v863_v23  ;;  %v785_v22 = vld [vmem:[#allocation8 + $0x948] sm:$0xff]  ;;  %v898_v23 = vld [vmem:[#allocation8 + $0xcd0] sm:$0xff] }
 0x23c   :  { %1275 = vmatprep.subr.mxu1 %v587_v24  ;;  %1319 = vmatpush2.msra.mxu0 %v862_v26  ;;  %v784_v24 = vld [vmem:[#allocation8 + $0x940] sm:$0xff]  ;;  %v893_v26 = vld [vmem:[#allocation8 + $0xca8] sm:$0xff] }
 0x23d   :  { %1276 = vmatpush2.msra.mxu1 %v586_v27  ;;  %1320 = vmatprep.subr.mxu0 %v857_v28  ;;  %v779_v27 = vld [vmem:[#allocation8 + $0x918] sm:$0xff]  ;;  %v892_v28 = vld [vmem:[#allocation8 + $0xca0] sm:$0xff] }
 0x23e   :  { %1278 = vmatmul.mubr.f32.vlgmr.msra.gmra.mxu1 %v2475_v52  ;;  %1321 = vmatpush2.msra.mxu0 %v856_v29  ;;  %v778_v29 = vld [vmem:[#allocation8 + $0x910] sm:$0xff] }
 0x23f   :  { %1355 = vmatprep.subr.mxu1 %v965_v30  ;;  %1322 = vmatprep.subr.mxu0 %v851_v31  ;;  %v887_v30 = vld [vmem:[#allocation8 + $0xc78] sm:$0xff]  ;;  %v886_v31 = vld [vmem:[#allocation8 + $0xc70] sm:$0xff] }
 0x240   :  { %1356 = vmatpush1.msra.mxu1 %v964_v32  ;;  %1323 = vmatpush2.msra.mxu0 %v850_v37  ;;  %v583_v32 = vld [vmem:[#allocation8 + $0x2f8] sm:$0xff]  ;;  %v881_v37 = vld [vmem:[#allocation8 + $0xc48] sm:$0xff] }
 0x241   :  { %1357 = vmatprep.subr.mxu1 %v959_v38  ;;  %1324 = vmatprep.subr.mxu0 %v845_v40  ;;  %v582_v38 = vld [vmem:[#allocation8 + $0x2f0] sm:$0xff]  ;;  %v880_v40 = vld [vmem:[#allocation8 + $0xc40] sm:$0xff] }
 0x242   :  { %1358 = vmatpush1.msra.mxu1 %v958_v41  ;;  %1325 = vmatpush2.msra.mxu0 %v844_v43  ;;  %v577_v41 = vld [vmem:[#allocation8 + $0x2c8] sm:$0xff]  ;;  %v875_v43 = vld [vmem:[#allocation8 + $0xc18] sm:$0xff] }
 0x243   :  { %1359 = vmatprep.subr.mxu1 %v953_v44  ;;  %1326 = vmatprep.subr.mxu0 %v839_v45  ;;  %v576_v44 = vld [vmem:[#allocation8 + $0x2c0] sm:$0xff]  ;;  %v874_v45 = vld [vmem:[#allocation8 + $0xc10] sm:$0xff] }
 0x244   :  { %1360 = vmatpush1.msra.mxu1 %v952_v46  ;;  %1327 = vmatpush2.msra.mxu0 %v838_v47  ;;  %v571_v46 = vld [vmem:[#allocation8 + $0x298] sm:$0xff]  ;;  %v570_v47 = vld [vmem:[#allocation8 + $0x290] sm:$0xff] }
 0x245   :  { %1361 = vmatprep.subr.mxu1 %v947_v48  ;;  %1328 = vmatprep.subr.mxu0 %v833_v49  ;;  %v775_v48 = vld [vmem:[#allocation8 + $0x8f8] sm:$0xff]  ;;  %v565_v49 = vld [vmem:[#allocation8 + $0x268] sm:$0xff] }
 0x246   :  { %1362 = vmatpush1.msra.mxu1 %v946_v35  ;;  %1329 = vmatpush2.msra.mxu0 %v832_v51  ;;  %v774_v35 = vld [vmem:[#allocation8 + $0x8f0] sm:$0xff]  ;;  %v564_v51 = vld [vmem:[#allocation8 + $0x260] sm:$0xff] }
 0x247   :  { %1363 = vmatprep.subr.mxu1 %v941_v53  ;;  %1330 = vmatprep.subr.mxu0 %v827_v54  ;;  %v769_v53 = vld [vmem:[#allocation8 + $0x8c8] sm:$0xff]  ;;  %v768_v54 = vld [vmem:[#allocation8 + $0x8c0] sm:$0xff] }
 0x248   :  { %1364 = vmatpush1.msra.mxu1 %v940_v55  ;;  %1331 = vmatpush2.msra.mxu0 %v826_v56  ;;  %v558_v55 = vld [vmem:[#allocation8 + $0x230] sm:$0xff]  ;;  %v763_v56 = vld [vmem:[#allocation8 + $0x898] sm:$0xff] }
 0x249   :  { %1365 = vmatprep.subr.mxu1 %v935_v57  ;;  %1332 = vmatprep.subr.mxu0 %v821_v58  ;;  %v553_v57 = vld [vmem:[#allocation8 + $0x208] sm:$0xff]  ;;  %v762_v58 = vld [vmem:[#allocation8 + $0x890] sm:$0xff] }
 0x24a   :  { %1366 = vmatpush1.msra.mxu1 %v934_v59  ;;  %1333 = vmatpush2.msra.mxu0 %v820_v60  ;;  %v552_v59 = vld [vmem:[#allocation8 + $0x200] sm:$0xff]  ;;  %v757_v60 = vld [vmem:[#allocation8 + $0x868] sm:$0xff] }
 0x24b   :  { %1367 = vmatprep.subr.mxu1 %v929_v61  ;;  %1334 = vmatprep.subr.mxu0 %v815_v62  ;;  %v547_v61 = vld [vmem:[#allocation8 + $0x1d8] sm:$0xff]  ;;  %v756_v62 = vld [vmem:[#allocation8 + $0x860] sm:$0xff] }
 0x24c   :  { %1368 = vmatpush1.msra.mxu1 %v928_v1  ;;  %1335 = vmatpush2.msra.mxu0 %v814_v3  ;;  %v546_v1 = vld [vmem:[#allocation8 + $0x1d0] sm:$0xff]  ;;  %v751_v3 = vld [vmem:[#allocation8 + $0x838] sm:$0xff] }
 0x24d   :  { %1369 = vmatprep.subr.mxu1 %v923_v4  ;;  %1336 = vmatprep.subr.mxu0 %v809_v5  ;;  %v750_v4 = vld [vmem:[#allocation8 + $0x830] sm:$0xff]  ;;  %v540_v5 = vld [vmem:[#allocation8 + $0x1a0] sm:$0xff] }
 0x24e   :  { %1370 = vmatpush1.msra.mxu1 %v922_v7  ;;  %1337 = vmatpush2.msra.mxu0 %v808_v8  ;;  %v745_v7 = vld [vmem:[#allocation8 + $0x808] sm:$0xff]  ;;  %v535_v8 = vld [vmem:[#allocation8 + $0x178] sm:$0xff] }
 0x24f   :  { %1371 = vmatprep.subr.mxu1 %v917_v9  ;;  %1338 = vmatprep.subr.mxu0 %v803_v10  ;;  %v744_v9 = vld [vmem:[#allocation8 + $0x800] sm:$0xff]  ;;  %v534_v10 = vld [vmem:[#allocation8 + $0x170] sm:$0xff] }
 0x250   :  { %1372 = vmatpush1.msra.mxu1 %v916_v11  ;;  %1339 = vmatpush2.msra.mxu0 %v802_v12  ;;  %v739_v11 = vld [vmem:[#allocation8 + $0x7d8] sm:$0xff]  ;;  %v529_v12 = vld [vmem:[#allocation8 + $0x148] sm:$0xff] }
 0x251   :  { %1373 = vmatprep.subr.mxu1 %v911_v13  ;;  %1340 = vmatprep.subr.mxu0 %v797_v14  ;;  %v738_v13 = vld [vmem:[#allocation8 + $0x7d0] sm:$0xff]  ;;  %v528_v14 = vld [vmem:[#allocation8 + $0x140] sm:$0xff] }
 0x252   :  { %1374 = vmatpush1.msra.mxu1 %v910_v15  ;;  %1341 = vmatpush2.msra.mxu0 %v796_v16  ;;  %v733_v15 = vld [vmem:[#allocation8 + $0x7a8] sm:$0xff]  ;;  %v523_v16 = vld [vmem:[#allocation8 + $0x118] sm:$0xff] }
 0x253   :  { %1375 = vmatprep.subr.mxu1 %v905_v17  ;;  %1342 = vmatprep.subr.mxu0 %v791_v18  ;;  %v732_v17 = vld [vmem:[#allocation8 + $0x7a0] sm:$0xff]  ;;  %v522_v18 = vld [vmem:[#allocation8 + $0x110] sm:$0xff] }
 0x254   :  { %1376 = vmatpush1.msra.mxu1 %v904_v19  ;;  %1343 = vmatpush2.msra.mxu0 %v790_v20  ;;  %v727_v19 = vld [vmem:[#allocation8 + $0x778] sm:$0xff]  ;;  %v517_v20 = vld [vmem:[#allocation8 + $0xe8] sm:$0xff] }
 0x255   :  { %1377 = vmatprep.subr.mxu1 %v899_v21  ;;  %1344 = vmatprep.subr.mxu0 %v785_v22  ;;  %v726_v21 = vld [vmem:[#allocation8 + $0x770] sm:$0xff]  ;;  %v516_v22 = vld [vmem:[#allocation8 + $0xe0] sm:$0xff] }
 0x256   :  { %1378 = vmatpush1.msra.mxu1 %v898_v23  ;;  %1345 = vmatpush2.msra.mxu0 %v784_v24  ;;  %v721_v23 = vld [vmem:[#allocation8 + $0x748] sm:$0xff]  ;;  %v511_v24 = vld [vmem:[#allocation8 + $0xb8] sm:$0xff] }
 0x257   :  { %1379 = vmatprep.subr.mxu1 %v893_v26  ;;  %1346 = vmatprep.subr.mxu0 %v779_v27  ;;  %v720_v26 = vld [vmem:[#allocation8 + $0x740] sm:$0xff]  ;;  %v510_v27 = vld [vmem:[#allocation8 + $0xb0] sm:$0xff] }
 0x258   :  { %1380 = vmatpush1.msra.mxu1 %v892_v28  ;;  %1347 = vmatpush2.msra.mxu0 %v778_v29  ;;  %v715_v28 = vld [vmem:[#allocation8 + $0x718] sm:$0xff]  ;;  %v505_v29 = vld [vmem:[#allocation8 + $0x88] sm:$0xff] }
 0x259   :  { %1381 = vmatprep.subr.mxu1 %v887_v30  ;;  %1349 = vmatmul.mubr.f32.vlgmr.msra.gmra.mxu0 %v2484_v2  ;;  %v714_v30 = vld [vmem:[#allocation8 + $0x710] sm:$0xff] }
 0x25a   :  { %1382 = vmatpush1.msra.mxu1 %v886_v31  ;;  %1426 = vmatprep.subr.mxu0 %v583_v32  ;;  %v504_v31 = vld [vmem:[#allocation8 + $0x80] sm:$0xff]  ;;  %v709_v32 = vld [vmem:[#allocation8 + $0x6e8] sm:$0xff] }
 0x25b   :  { %1383 = vmatprep.subr.mxu1 %v881_v37  ;;  %1427 = vmatpush1.msra.mxu0 %v582_v38  ;;  %v499_v37 = vld [vmem:[#allocation8 + $0x58] sm:$0xff]  ;;  %v708_v38 = vld [vmem:[#allocation8 + $0x6e0] sm:$0xff] }
 0x25c   :  { %1490 = vmatprep.mubr.f32.mxu0 %v2473_v50  ;;  %1384 = vmatpush1.msra.mxu1 %v880_v40  ;;  %v559_v50 = vld [vmem:[#allocation8 + $0x238] sm:$0xff]  ;;  %v498_v40 = vld [vmem:[#allocation8 + $0x50] sm:$0xff] }
 0x25d   :  { %1428 = vmatprep.subr.mxu0 %v577_v41  ;;  %1385 = vmatprep.subr.mxu1 %v875_v43  ;;  %v703_v41 = vld [vmem:[#allocation8 + $0x6b8] sm:$0xff]  ;;  %v493_v43 = vld [vmem:[#allocation8 + $0x28] sm:$0xff] }
 0x25e   :  { %1429 = vmatpush1.msra.mxu0 %v576_v44  ;;  %1386 = vmatpush1.msra.mxu1 %v874_v45  ;;  %v702_v44 = vld [vmem:[#allocation8 + $0x6b0] sm:$0xff]  ;;  %v492_v45 = vld [vmem:[#allocation8 + $0x20] sm:$0xff] }
 0x25f   :  { %1419 = vmatprep.mubr.f32.mxu1 %v2330_v0  ;;  %1430 = vmatprep.subr.mxu0 %v571_v46  ;;  %v697_v46 = vld [vmem:[#allocation8 + $0x688] sm:$0xff] }
 0x260   :  { %1420 = vmatmul.mubr.f32.vlgmr.msra.gmra.mxu1 %v2494_v6  ;;  %1431 = vmatpush1.msra.mxu0 %v570_v47  ;;  %v679_v47 = vld [vmem:[#allocation8 + $0x5f8] sm:$0xff] }
 0x261   :  { %1497 = vmatprep.subr.mxu1 %v775_v48  ;;  %1432 = vmatprep.subr.mxu0 %v565_v49  ;;  %v696_v48 = vld [vmem:[#allocation8 + $0x680] sm:$0xff]  ;;  %v678_v49 = vld [vmem:[#allocation8 + $0x5f0] sm:$0xff] }
 0x262   :  { %1498 = vmatpush1.msra.mxu1 %v774_v35  ;;  %1561 = vmatprep.mubr.f32.mxu1 %v2482_v63  ;;  %v541_v63 = vld [vmem:[#allocation8 + $0x1a8] sm:$0xff]  ;;  %v691_v35 = vld [vmem:[#allocation8 + $0x658] sm:$0xff] }
 0x263   :  { %1433 = vmatpush1.msra.mxu0 %v564_v51  ;;  %1499 = vmatprep.subr.mxu1 %v769_v53  ;;  %v673_v51 = vld [vmem:[#allocation8 + $0x5c8] sm:$0xff]  ;;  %v690_v53 = vld [vmem:[#allocation8 + $0x650] sm:$0xff] }
 0x264   :  { %1434 = vmatprep.subr.mxu0 %v559_v50  ;;  %1500 = vmatpush1.msra.mxu1 %v768_v54  ;;  %v672_v50 = vld [vmem:[#allocation8 + $0x5c0] sm:$0xff]  ;;  %v685_v54 = vld [vmem:[#allocation8 + $0x628] sm:$0xff] }
 0x265   :  { %1435 = vmatpush1.msra.mxu0 %v558_v55  ;;  %1501 = vmatprep.subr.mxu1 %v763_v56  ;;  %v667_v55 = vld [vmem:[#allocation8 + $0x598] sm:$0xff]  ;;  %v684_v56 = vld [vmem:[#allocation8 + $0x620] sm:$0xff] }
 0x266   :  { %1436 = vmatprep.subr.mxu0 %v553_v57  ;;  %1502 = vmatpush1.msra.mxu1 %v762_v58  ;;  %v666_v57 = vld [vmem:[#allocation8 + $0x590] sm:$0xff]  ;;  %v871_v58 = vld [vmem:[#allocation8 + $0xbf8] sm:$0xff] }
 0x267   :  { %1437 = vmatpush1.msra.mxu0 %v552_v59  ;;  %1503 = vmatprep.subr.mxu1 %v757_v60  ;;  %v661_v59 = vld [vmem:[#allocation8 + $0x568] sm:$0xff]  ;;  %v870_v60 = vld [vmem:[#allocation8 + $0xbf0] sm:$0xff] }
 0x268   :  { %1438 = vmatprep.subr.mxu0 %v547_v61  ;;  %1504 = vmatpush1.msra.mxu1 %v756_v62  ;;  %v660_v61 = vld [vmem:[#allocation8 + $0x560] sm:$0xff]  ;;  %v865_v62 = vld [vmem:[#allocation8 + $0xbc8] sm:$0xff] }
 0x269   :  { %1439 = vmatpush1.msra.mxu0 %v546_v1  ;;  %1505 = vmatprep.subr.mxu1 %v751_v3  ;;  %v655_v1 = vld [vmem:[#allocation8 + $0x538] sm:$0xff]  ;;  %v864_v3 = vld [vmem:[#allocation8 + $0xbc0] sm:$0xff] }
 0x26a   :  { %1440 = vmatprep.subr.mxu0 %v541_v63  ;;  %1506 = vmatpush1.msra.mxu1 %v750_v4  ;;  %v654_v63 = vld [vmem:[#allocation8 + $0x530] sm:$0xff]  ;;  %v859_v4 = vld [vmem:[#allocation8 + $0xb98] sm:$0xff] }
 0x26b   :  { %1441 = vmatpush1.msra.mxu0 %v540_v5  ;;  %1507 = vmatprep.subr.mxu1 %v745_v7  ;;  %v649_v5 = vld [vmem:[#allocation8 + $0x508] sm:$0xff]  ;;  %v858_v7 = vld [vmem:[#allocation8 + $0xb90] sm:$0xff] }
 0x26c   :  { %1442 = vmatprep.subr.mxu0 %v535_v8  ;;  %1508 = vmatpush1.msra.mxu1 %v744_v9  ;;  %v648_v8 = vld [vmem:[#allocation8 + $0x500] sm:$0xff]  ;;  %v853_v9 = vld [vmem:[#allocation8 + $0xb68] sm:$0xff] }
 0x26d   :  { %1443 = vmatpush1.msra.mxu0 %v534_v10  ;;  %1509 = vmatprep.subr.mxu1 %v739_v11  ;;  %v643_v10 = vld [vmem:[#allocation8 + $0x4d8] sm:$0xff]  ;;  %v852_v11 = vld [vmem:[#allocation8 + $0xb60] sm:$0xff] }
 0x26e   :  { %1444 = vmatprep.subr.mxu0 %v529_v12  ;;  %1510 = vmatpush1.msra.mxu1 %v738_v13  ;;  %v642_v12 = vld [vmem:[#allocation8 + $0x4d0] sm:$0xff]  ;;  %v847_v13 = vld [vmem:[#allocation8 + $0xb38] sm:$0xff] }
 0x26f   :  { %1445 = vmatpush1.msra.mxu0 %v528_v14  ;;  %1511 = vmatprep.subr.mxu1 %v733_v15  ;;  %v637_v14 = vld [vmem:[#allocation8 + $0x4a8] sm:$0xff]  ;;  %v846_v15 = vld [vmem:[#allocation8 + $0xb30] sm:$0xff] }
 0x270   :  { %1446 = vmatprep.subr.mxu0 %v523_v16  ;;  %1512 = vmatpush1.msra.mxu1 %v732_v17  ;;  %v636_v16 = vld [vmem:[#allocation8 + $0x4a0] sm:$0xff]  ;;  %v841_v17 = vld [vmem:[#allocation8 + $0xb08] sm:$0xff] }
 0x271   :  { %1447 = vmatpush1.msra.mxu0 %v522_v18  ;;  %1513 = vmatprep.subr.mxu1 %v727_v19  ;;  %v631_v18 = vld [vmem:[#allocation8 + $0x478] sm:$0xff]  ;;  %v840_v19 = vld [vmem:[#allocation8 + $0xb00] sm:$0xff] }
 0x272   :  { %1448 = vmatprep.subr.mxu0 %v517_v20  ;;  %1514 = vmatpush1.msra.mxu1 %v726_v21  ;;  %v630_v20 = vld [vmem:[#allocation8 + $0x470] sm:$0xff]  ;;  %v835_v21 = vld [vmem:[#allocation8 + $0xad8] sm:$0xff] }
 0x273   :  { %1449 = vmatpush1.msra.mxu0 %v516_v22  ;;  %1515 = vmatprep.subr.mxu1 %v721_v23  ;;  %v625_v22 = vld [vmem:[#allocation8 + $0x448] sm:$0xff]  ;;  %v834_v23 = vld [vmem:[#allocation8 + $0xad0] sm:$0xff] }
 0x274   :  { %1450 = vmatprep.subr.mxu0 %v511_v24  ;;  %1516 = vmatpush1.msra.mxu1 %v720_v26  ;;  %v624_v24 = vld [vmem:[#allocation8 + $0x440] sm:$0xff]  ;;  %v829_v26 = vld [vmem:[#allocation8 + $0xaa8] sm:$0xff] }
 0x275   :  { %1451 = vmatpush1.msra.mxu0 %v510_v27  ;;  %1517 = vmatprep.subr.mxu1 %v715_v28  ;;  %v619_v27 = vld [vmem:[#allocation8 + $0x418] sm:$0xff]  ;;  %v828_v28 = vld [vmem:[#allocation8 + $0xaa0] sm:$0xff] }
 0x276   :  { %1452 = vmatprep.subr.mxu0 %v505_v29  ;;  %1518 = vmatpush1.msra.mxu1 %v714_v30  ;;  %v618_v29 = vld [vmem:[#allocation8 + $0x410] sm:$0xff]  ;;  %v823_v30 = vld [vmem:[#allocation8 + $0xa78] sm:$0xff] }
 0x277   :  { %1453 = vmatpush1.msra.mxu0 %v504_v31  ;;  %1519 = vmatprep.subr.mxu1 %v709_v32  ;;  %v613_v31 = vld [vmem:[#allocation8 + $0x3e8] sm:$0xff]  ;;  %v822_v32 = vld [vmem:[#allocation8 + $0xa70] sm:$0xff] }
 0x278   :  { %1454 = vmatprep.subr.mxu0 %v499_v37  ;;  %1520 = vmatpush1.msra.mxu1 %v708_v38  ;;  %v612_v37 = vld [vmem:[#allocation8 + $0x3e0] sm:$0xff]  ;;  %v817_v38 = vld [vmem:[#allocation8 + $0xa48] sm:$0xff] }
 0x279   :  { %1455 = vmatpush1.msra.mxu0 %v498_v40  ;;  %1521 = vmatprep.subr.mxu1 %v703_v41  ;;  %v607_v40 = vld [vmem:[#allocation8 + $0x3b8] sm:$0xff]  ;;  %v816_v41 = vld [vmem:[#allocation8 + $0xa40] sm:$0xff] }
 0x27a   :  { %1456 = vmatprep.subr.mxu0 %v493_v43  ;;  %1522 = vmatpush1.msra.mxu1 %v702_v44  ;;  %v606_v43 = vld [vmem:[#allocation8 + $0x3b0] sm:$0xff]  ;;  %v811_v44 = vld [vmem:[#allocation8 + $0xa18] sm:$0xff] }
 0x27b   :  { %1457 = vmatpush1.msra.mxu0 %v492_v45  ;;  %1523 = vmatprep.subr.mxu1 %v697_v46  ;;  %v601_v45 = vld [vmem:[#allocation8 + $0x388] sm:$0xff]  ;;  %v810_v46 = vld [vmem:[#allocation8 + $0xa10] sm:$0xff] }
 0x27c   :  { %1458 = vmatprep.subr.mxu0 %v679_v47  ;;  %1524 = vmatpush1.msra.mxu1 %v696_v48  ;;  %v600_v47 = vld [vmem:[#allocation8 + $0x380] sm:$0xff]  ;;  %v805_v48 = vld [vmem:[#allocation8 + $0x9e8] sm:$0xff] }
 0x27d   :  { %1459 = vmatpush2.msra.mxu0 %v678_v49  ;;  %1525 = vmatprep.subr.mxu1 %v691_v35  ;;  %v595_v49 = vld [vmem:[#allocation8 + $0x358] sm:$0xff]  ;;  %v804_v35 = vld [vmem:[#allocation8 + $0x9e0] sm:$0xff] }
 0x27e   :  { %1460 = vmatprep.subr.mxu0 %v673_v51  ;;  %1526 = vmatpush1.msra.mxu1 %v690_v53  ;;  %v594_v51 = vld [vmem:[#allocation8 + $0x350] sm:$0xff]  ;;  %v799_v53 = vld [vmem:[#allocation8 + $0x9b8] sm:$0xff] }
 0x27f   :  { %1461 = vmatpush2.msra.mxu0 %v672_v50  ;;  %1527 = vmatprep.subr.mxu1 %v685_v54  ;;  %v589_v50 = vld [vmem:[#allocation8 + $0x328] sm:$0xff]  ;;  %v798_v54 = vld [vmem:[#allocation8 + $0x9b0] sm:$0xff] }
 0x280   :  { %1462 = vmatprep.subr.mxu0 %v667_v55  ;;  %1528 = vmatpush1.msra.mxu1 %v684_v56  ;;  %v588_v55 = vld [vmem:[#allocation8 + $0x320] sm:$0xff]  ;;  %v793_v56 = vld [vmem:[#allocation8 + $0x988] sm:$0xff] }
 0x281   :  { %1463 = vmatpush2.msra.mxu0 %v666_v57  ;;  %1529 = vmatprep.subr.mxu1 %v871_v58  ;;  %v792_v57 = vld [vmem:[#allocation8 + $0x980] sm:$0xff]  ;;  %v967_v58 = vld [vmem:[#allocation8 + $0xef8] sm:$0xff] }
 0x282   :  { %1464 = vmatprep.subr.mxu0 %v661_v59  ;;  %1530 = vmatpush2.msra.mxu1 %v870_v60  ;;  %v787_v59 = vld [vmem:[#allocation8 + $0x958] sm:$0xff]  ;;  %v966_v60 = vld [vmem:[#allocation8 + $0xef0] sm:$0xff] }
 0x283   :  { %1465 = vmatpush2.msra.mxu0 %v660_v61  ;;  %1531 = vmatprep.subr.mxu1 %v865_v62  ;;  %v786_v61 = vld [vmem:[#allocation8 + $0x950] sm:$0xff]  ;;  %v961_v62 = vld [vmem:[#allocation8 + $0xec8] sm:$0xff] }
 0x284   :  { %1466 = vmatprep.subr.mxu0 %v655_v1  ;;  %1532 = vmatpush2.msra.mxu1 %v864_v3  ;;  %v781_v1 = vld [vmem:[#allocation8 + $0x928] sm:$0xff]  ;;  %v960_v3 = vld [vmem:[#allocation8 + $0xec0] sm:$0xff] }
 0x285   :  { %1467 = vmatpush2.msra.mxu0 %v654_v63  ;;  %1533 = vmatprep.subr.mxu1 %v859_v4  ;;  %v780_v63 = vld [vmem:[#allocation8 + $0x920] sm:$0xff]  ;;  %v955_v4 = vld [vmem:[#allocation8 + $0xe98] sm:$0xff] }
 0x286   :  { %1468 = vmatprep.subr.mxu0 %v649_v5  ;;  %1534 = vmatpush2.msra.mxu1 %v858_v7  ;;  %v954_v5 = vld [vmem:[#allocation8 + $0xe90] sm:$0xff]  ;;  %v949_v7 = vld [vmem:[#allocation8 + $0xe68] sm:$0xff] }
 0x287   :  { %1469 = vmatpush2.msra.mxu0 %v648_v8  ;;  %1535 = vmatprep.subr.mxu1 %v853_v9  ;;  %v1670_v8 = vld [vmem:[#allocation11 + $0xf8] sm:$0xff] }
 0x288   :  { %1470 = vmatprep.subr.mxu0 %v643_v10  ;;  %1536 = vmatpush2.msra.mxu1 %v852_v11  ;;  %v1654_v9 = vld [vmem:[#allocation11 + $0x78] sm:$0xff]  ;;  %v1669_v11 = vld [vmem:[#allocation11 + $0xf0] sm:$0xff] }
 0x289   :  { %1471 = vmatpush2.msra.mxu0 %v642_v12  ;;  %1537 = vmatprep.subr.mxu1 %v847_v13  ;;  %v943_v10 = vld [vmem:[#allocation8 + $0xe38] sm:$0xff]  ;;  %v942_v12 = vld [vmem:[#allocation8 + $0xe30] sm:$0xff] }
 0x28a   :  { %1472 = vmatprep.subr.mxu0 %v637_v14  ;;  %1538 = vmatpush2.msra.mxu1 %v846_v15  ;;  %v1653_v13 = vld [vmem:[#allocation11 + $0x70] sm:$0xff]  ;;  %v937_v14 = vld [vmem:[#allocation8 + $0xe08] sm:$0xff] }
 0x28b   :  { %1473 = vmatpush2.msra.mxu0 %v636_v16  ;;  %1539 = vmatprep.subr.mxu1 %v841_v17  ;;  %v1668_v15 = vld [vmem:[#allocation11 + $0xe8] sm:$0xff]  ;;  %v936_v16 = vld [vmem:[#allocation8 + $0xe00] sm:$0xff] }
 0x28c   :  { %1474 = vmatprep.subr.mxu0 %v631_v18  ;;  %1540 = vmatpush2.msra.mxu1 %v840_v19  ;;  %v1652_v17 = vld [vmem:[#allocation11 + $0x68] sm:$0xff]  ;;  %v1667_v18 = vld [vmem:[#allocation11 + $0xe0] sm:$0xff] }
 0x28d   :  { %1475 = vmatpush2.msra.mxu0 %v630_v20  ;;  %1541 = vmatprep.subr.mxu1 %v835_v21  ;;  %v930_v19 = vld [vmem:[#allocation8 + $0xdd0] sm:$0xff]  ;;  %v925_v20 = vld [vmem:[#allocation8 + $0xda8] sm:$0xff]  ;;  %v1666_v21 = vld [vmem:[#allocation11 + $0xd8] sm:$0xff] }
 0x28e   :  { %1476 = vmatprep.subr.mxu0 %v625_v22  ;;  %1542 = vmatpush2.msra.mxu1 %v834_v23  ;;  %v924_v22 = vld [vmem:[#allocation8 + $0xda0] sm:$0xff] }
 0x28f   :  { %1477 = vmatpush2.msra.mxu0 %v624_v24  ;;  %1543 = vmatprep.subr.mxu1 %v829_v26  ;;  %v1650_v23 = vld [vmem:[#allocation11 + $0x58] sm:$0xff]  ;;  %v1665_v26 = vld [vmem:[#allocation11 + $0xd0] sm:$0xff] }
 0x290   :  { %1478 = vmatprep.subr.mxu0 %v619_v27  ;;  %1544 = vmatpush2.msra.mxu1 %v828_v28  ;;  %v919_v24 = vld [vmem:[#allocation8 + $0xd78] sm:$0xff]  ;;  %v918_v27 = vld [vmem:[#allocation8 + $0xd70] sm:$0xff] }
 0x291   :  { %1479 = vmatpush2.msra.mxu0 %v618_v29  ;;  %1545 = vmatprep.subr.mxu1 %v823_v30  ;;  %v1649_v28 = vld [vmem:[#allocation11 + $0x50] sm:$0xff]  ;;  %v913_v29 = vld [vmem:[#allocation8 + $0xd48] sm:$0xff] }
 0x292   :  { %1480 = vmatprep.subr.mxu0 %v613_v31  ;;  %1546 = vmatpush2.msra.mxu1 %v822_v32  ;;  %v1664_v30 = vld [vmem:[#allocation11 + $0xc8] sm:$0xff]  ;;  %v912_v31 = vld [vmem:[#allocation8 + $0xd40] sm:$0xff] }
 0x293   :  { %1481 = vmatpush2.msra.mxu0 %v612_v37  ;;  %1547 = vmatprep.subr.mxu1 %v817_v38  ;;  %v1648_v32 = vld [vmem:[#allocation11 + $0x48] sm:$0xff]  ;;  %v907_v37 = vld [vmem:[#allocation8 + $0xd18] sm:$0xff]  ;;  %v1663_v38 = vld [vmem:[#allocation11 + $0xc0] sm:$0xff] }
 0x294   :  { %1482 = vmatprep.subr.mxu0 %v607_v40  ;;  %1548 = vmatpush2.msra.mxu1 %v816_v41  ;;  %v906_v40 = vld [vmem:[#allocation8 + $0xd10] sm:$0xff]  ;;  %v1647_v41 = vld [vmem:[#allocation11 + $0x40] sm:$0xff] }
 0x295   :  { %1483 = vmatpush2.msra.mxu0 %v606_v43  ;;  %1549 = vmatprep.subr.mxu1 %v811_v44  ;;  %v901_v43 = vld [vmem:[#allocation8 + $0xce8] sm:$0xff]  ;;  %v1662_v44 = vld [vmem:[#allocation11 + $0xb8] sm:$0xff] }
 0x296   :  { %1484 = vmatprep.subr.mxu0 %v601_v45  ;;  %1550 = vmatpush2.msra.mxu1 %v810_v46  ;;  %v900_v45 = vld [vmem:[#allocation8 + $0xce0] sm:$0xff] }
 0x297   :  { %1485 = vmatpush2.msra.mxu0 %v600_v47  ;;  %1551 = vmatprep.subr.mxu1 %v805_v48  ;;  %v1646_v46 = vld [vmem:[#allocation11 + $0x38] sm:$0xff]  ;;  %v1661_v48 = vld [vmem:[#allocation11 + $0xb0] sm:$0xff] }
 0x298   :  { %1486 = vmatprep.subr.mxu0 %v595_v49  ;;  %1552 = vmatpush2.msra.mxu1 %v804_v35  ;;  %v895_v47 = vld [vmem:[#allocation8 + $0xcb8] sm:$0xff]  ;;  %v894_v49 = vld [vmem:[#allocation8 + $0xcb0] sm:$0xff] }
 0x299   :  { %1487 = vmatpush2.msra.mxu0 %v594_v51  ;;  %1553 = vmatprep.subr.mxu1 %v799_v53  ;;  %v1645_v35 = vld [vmem:[#allocation11 + $0x30] sm:$0xff]  ;;  %v889_v51 = vld [vmem:[#allocation8 + $0xc88] sm:$0xff] }
 0x29a   :  { %1488 = vmatprep.subr.mxu0 %v589_v50  ;;  %1554 = vmatpush2.msra.mxu1 %v798_v54  ;;  %v1660_v53 = vld [vmem:[#allocation11 + $0xa8] sm:$0xff]  ;;  %v888_v50 = vld [vmem:[#allocation8 + $0xc80] sm:$0xff] }
 0x29b   :  { %1489 = vmatpush2.msra.mxu0 %v588_v55  ;;  %1555 = vmatprep.subr.mxu1 %v793_v56  ;;  %v1644_v54 = vld [vmem:[#allocation11 + $0x28] sm:$0xff]  ;;  %v883_v55 = vld [vmem:[#allocation8 + $0xc58] sm:$0xff]  ;;  %v1659_v56 = vld [vmem:[#allocation11 + $0xa0] sm:$0xff] }
 0x29c   :  { %1491 = vmatmul.mubr.f32.vlgmr.msra.gmra.mxu0 %v2475_v52  ;;  %1556 = vmatpush2.msra.mxu1 %v792_v57  ;;  %v948_v52 = vld [vmem:[#allocation8 + $0xe60] sm:$0xff]  ;;  %v882_v57 = vld [vmem:[#allocation8 + $0xc50] sm:$0xff] }
 0x29d   :  { %1568 = vmatprep.subr.mxu0 %v967_v58  ;;  %1557 = vmatprep.subr.mxu1 %v787_v59  ;;  %v1643_v58 = vld [vmem:[#allocation11 + $0x20] sm:$0xff] }
 0x29e   :  { %1569 = vmatpush1.msra.mxu0 %v966_v60  ;;  %1558 = vmatpush2.msra.mxu1 %v786_v61  ;;  %v877_v59 = vld [vmem:[#allocation8 + $0xc28] sm:$0xff]  ;;  %v1658_v60 = vld [vmem:[#allocation11 + $0x98] sm:$0xff] }
 0x29f   :  { %1570 = vmatprep.subr.mxu0 %v961_v62  ;;  %1559 = vmatprep.subr.mxu1 %v781_v1  ;;  %v876_v61 = vld [vmem:[#allocation8 + $0xc20] sm:$0xff]  ;;  %v1657_v1 = vld [vmem:[#allocation11 + $0x90] sm:$0xff] }
 0x2a0   :  { %1571 = vmatpush1.msra.mxu0 %v960_v3  ;;  %1560 = vmatpush2.msra.mxu1 %v780_v63  ;;  %v1642_v62 = vld [vmem:[#allocation11 + $0x18] sm:$0xff]  ;;  %v1641_v3 = vld [vmem:[#allocation11 + $0x10] sm:$0xff] }
 0x2a1   :  { %1572 = vmatprep.subr.mxu0 %v955_v4  ;;  %1562 = vmatmul.mubr.f32.vlgmr.msra.gmra.mxu1 %v2484_v2  ;;  %v931_v2 = vld [vmem:[#allocation8 + $0xdd8] sm:$0xff]  ;;  %v1656_v4 = vld [vmem:[#allocation11 + $0x88] sm:$0xff] }
 0x2a2   :  { %1573 = vmatpush1.msra.mxu0 %v954_v5  ;;  %1632 = vmatprep.mubr.f32.mxu0 %v2330_v0  ;;  %v1651_v0 = vld [vmem:[#allocation11 + $0x60] sm:$0xff]  ;;  %v1702_v63 = vld [vmem:[#allocation11 + $0x1f8] sm:$0xff] }
 0x2a3   :  { %1574 = vmatprep.subr.mxu0 %v949_v7  ;;  %1996 = vmatprep.subr.mxu1 %v1670_v8  ;;  %v1686_v5 = vld [vmem:[#allocation11 + $0x178] sm:$0xff]  ;;  %v1640_v7 = vld [vmem:[#allocation11 + $0x8] sm:$0xff]  ;;  %v1701_v8 = vld [vmem:[#allocation11 + $0x1f0] sm:$0xff] }
 0x2a4   :  { %1575 = vmatpush1.msra.mxu0 %v948_v52  ;;  %1997 = vmatpush3.msra.mxu1 %v1654_v9  ;;  %v1655_v52 = vld [vmem:[#allocation11 + $0x80] sm:$0xff]  ;;  %v1685_v9 = vld [vmem:[#allocation11 + $0x170] sm:$0xff] }
 0x2a5   :  { %1576 = vmatprep.subr.mxu0 %v943_v10  ;;  %1998 = vmatprep.subr.mxu1 %v1669_v11  ;;  %v1639_v10 = vld [vmem:[#allocation11] sm:$0xff]  ;;  %v1700_v11 = vld [vmem:[#allocation11 + $0x1e8] sm:$0xff] }
 0x2a6   :  { %1577 = vmatpush1.msra.mxu0 %v942_v12  ;;  %1999 = vmatpush3.msra.mxu1 %v1653_v13  ;;  %v1684_v12 = vld [vmem:[#allocation11 + $0x168] sm:$0xff]  ;;  %v1699_v13 = vld [vmem:[#allocation11 + $0x1e0] sm:$0xff] }
 0x2a7   :  { %1578 = vmatprep.subr.mxu0 %v937_v14  ;;  %2000 = vmatprep.subr.mxu1 %v1668_v15  ;;  %v1698_v14 = vld [vmem:[#allocation11 + $0x1d8] sm:$0xff] }
 0x2a8   :  { %1579 = vmatpush1.msra.mxu0 %v936_v16  ;;  %2001 = vmatpush3.msra.mxu1 %v1652_v17  ;;  %v1682_v15 = vld [vmem:[#allocation11 + $0x158] sm:$0xff]  ;;  %v1697_v16 = vld [vmem:[#allocation11 + $0x1d0] sm:$0xff] }
 0x2a9   :  { %1580 = vmatprep.subr.mxu0 %v931_v2  ;;  %2002 = vmatprep.subr.mxu1 %v1667_v18  ;;  %v1681_v17 = vld [vmem:[#allocation11 + $0x150] sm:$0xff]  ;;  %v1696_v2 = vld [vmem:[#allocation11 + $0x1c8] sm:$0xff] }
 0x2aa   :  { %1581 = vmatpush1.msra.mxu0 %v930_v19  ;;  %2003 = vmatpush3.msra.mxu1 %v1651_v0  ;;  %v1680_v18 = vld [vmem:[#allocation11 + $0x148] sm:$0xff]  ;;  %v1695_v19 = vld [vmem:[#allocation11 + $0x1c0] sm:$0xff] }
 0x2ab   :  { %1582 = vmatprep.subr.mxu0 %v925_v20  ;;  %2004 = vmatprep.subr.mxu1 %v1666_v21  ;;  %v1679_v0 = vld [vmem:[#allocation11 + $0x140] sm:$0xff]  ;;  %v1694_v20 = vld [vmem:[#allocation11 + $0x1b8] sm:$0xff] }
 0x2ac   :  { %1583 = vmatpush1.msra.mxu0 %v924_v22  ;;  %2005 = vmatpush3.msra.mxu1 %v1650_v23  ;;  %v1678_v21 = vld [vmem:[#allocation11 + $0x138] sm:$0xff]  ;;  %v1693_v22 = vld [vmem:[#allocation11 + $0x1b0] sm:$0xff] }
 0x2ad   :  { %1584 = vmatprep.subr.mxu0 %v919_v24  ;;  %2006 = vmatprep.subr.mxu1 %v1665_v26  ;;  %v1677_v23 = vld [vmem:[#allocation11 + $0x130] sm:$0xff]  ;;  %v1692_v24 = vld [vmem:[#allocation11 + $0x1a8] sm:$0xff] }
 0x2ae   :  { %1585 = vmatpush1.msra.mxu0 %v918_v27  ;;  %2007 = vmatpush3.msra.mxu1 %v1649_v28  ;;  %v1676_v27 = vld [vmem:[#allocation11 + $0x128] sm:$0xff]  ;;  %v2508_v28 = vld [vmem:[#allocation10] sm:$0x3f] }
 0x2af   :  { %1586 = vmatprep.subr.mxu0 %v913_v29  ;;  %2008 = vmatprep.subr.mxu1 %v1664_v30  ;;  %v1691_v29 = vld [vmem:[#allocation11 + $0x1a0] sm:$0xff] }
 0x2b0   :  { %1587 = vmatpush1.msra.mxu0 %v912_v31  ;;  %2009 = vmatpush3.msra.mxu1 %v1648_v32  ;;  %v1675_v31 = vld [vmem:[#allocation11 + $0x120] sm:$0xff]  ;;  %v977_v32 = vrot.slane %v2508_v28, %v228_v36  ;;  %v1672_v36 = vld [vmem:[#allocation11 + $0x108] sm:$0xff] }
 0x2b1   :  { %1588 = vmatprep.subr.mxu0 %v907_v37  ;;  %2010 = vmatprep.subr.mxu1 %v1663_v38  ;;  %v1690_v37 = vld [vmem:[#allocation11 + $0x198] sm:$0xff]  ;;  %v973_v38 = vrot.slane %v2508_v28, %v224_v34 }
 0x2b2   :  { %1589 = vmatpush1.msra.mxu0 %v906_v40  ;;  %2011 = vmatpush3.msra.mxu1 %v1647_v41  ;;  %v1674_v41 = vld [vmem:[#allocation11 + $0x118] sm:$0xff] }
 0x2b3   :  { %1590 = vmatprep.subr.mxu0 %v901_v43  ;;  %2012 = vmatprep.subr.mxu1 %v1662_v44  ;;  %v1689_v43 = vld [vmem:[#allocation11 + $0x190] sm:$0xff] }
 0x2b4   :  { %1591 = vmatpush1.msra.mxu0 %v900_v45  ;;  %2013 = vmatpush3.msra.mxu1 %v1646_v46  ;;  %v1673_v45 = vld [vmem:[#allocation11 + $0x110] sm:$0xff] }
 0x2b5   :  { %1592 = vmatprep.subr.mxu0 %v895_v47  ;;  %2014 = vmatprep.subr.mxu1 %v1661_v48  ;;  %v1688_v47 = vld [vmem:[#allocation11 + $0x188] sm:$0xff] }
 0x2b6   :  { %1593 = vmatpush1.msra.mxu0 %v894_v49  ;;  %2015 = vmatpush3.msra.mxu1 %v1645_v35 }
 0x2b7   :  { %1594 = vmatprep.subr.mxu0 %v889_v51  ;;  %2016 = vmatprep.subr.mxu1 %v1660_v53  ;;  %v1066_v26 = vpop.f32.mrf.mxu0  ;;  %v1687_v51 = vld [vmem:[#allocation11 + $0x180] sm:$0xff] }
 0x2b8   :  { %1595 = vmatpush1.msra.mxu0 %v888_v50  ;;  %2017 = vmatpush3.msra.mxu1 %v1644_v54  ;;  %v1067_v48 = vadd.f32 %v1066_v26, %v973_v38  ;;  %v1671_v50 = vld [vmem:[#allocation11 + $0x100] sm:$0xff]  ;;  %v985_v26 = vrot.slane %v2508_v28, %v236_v42 }
 0x2b9   :  { %1596 = vmatprep.subr.mxu0 %v883_v55  ;;  %2018 = vmatprep.subr.mxu1 %v1659_v56  ;;  %v1068_v40 = vpop.f32.mrf.mxu0  ;;  %v1734_v56 = vld [vmem:[#allocation11 + $0x2f8] sm:$0xff] }
 0x2ba   :  { %1597 = vmatpush1.msra.mxu0 %v882_v57  ;;  %2019 = vmatpush3.msra.mxu1 %v1643_v58  ;;  %v1069_v46 = vadd.f32 %v1068_v40, %v977_v32  ;;  %v1718_v57 = vld [vmem:[#allocation11 + $0x278] sm:$0xff]  ;;  %v1733_v58 = vld [vmem:[#allocation11 + $0x2f0] sm:$0xff] }
 0x2bb   :  { %1598 = vmatprep.subr.mxu0 %v877_v59  ;;  %2020 = vmatprep.subr.mxu1 %v1658_v60  ;;  %v1717_v59 = vld [vmem:[#allocation11 + $0x270] sm:$0xff]  ;;  %v1732_v60 = vld [vmem:[#allocation11 + $0x2e8] sm:$0xff] }
 0x2bc   :  { %1599 = vmatpush1.msra.mxu0 %v876_v61  ;;  %2021 = vmatpush3.msra.mxu1 %v1642_v62  ;;  %v1716_v61 = vld [vmem:[#allocation11 + $0x268] sm:$0xff]  ;;  %v1731_v62 = vld [vmem:[#allocation11 + $0x2e0] sm:$0xff] }
 0x2bd   :  { %1633 = vmatmul.mubr.f32.vlgmr.msra.gmra.mxu0 %v2494_v6  ;;  %2022 = vmatprep.subr.mxu1 %v1657_v1  ;;  %v1683_v6 = vld [vmem:[#allocation11 + $0x160] sm:$0xff]  ;;  %v1137_v30 = vpop.f32.mrf.mxu1 }
 0x2be   :  { %2023 = vmatpush3.msra.mxu1 %v1641_v3  ;;  %2031 = vmatprep.subr.mxu0 %v1702_v63  ;;  %v1138_v53 = vadd.f32 %v1137_v30, %v1067_v48  ;;  %v1715_v1 = vld [vmem:[#allocation11 + $0x260] sm:$0xff]  ;;  %v1730_v3 = vld [vmem:[#allocation11 + $0x2d8] sm:$0xff] }
 0x2bf   :  { %2024 = vmatprep.subr.mxu1 %v1656_v4  ;;  %2032 = vmatpush3.msra.mxu0 %v1686_v5  ;;  %v1139_v44 = vpop.f32.mrf.mxu1  ;;  %v1714_v63 = vld [vmem:[#allocation11 + $0x258] sm:$0xff]  ;;  %v1729_v4 = vld [vmem:[#allocation11 + $0x2d0] sm:$0xff] }
 0x2c0   :  { %2025 = vmatpush3.msra.mxu1 %v1640_v7  ;;  %2033 = vmatprep.subr.mxu0 %v1701_v8  ;;  %v1140_v35 = vadd.f32 %v1139_v44, %v1069_v46  ;;  %v1713_v5 = vld [vmem:[#allocation11 + $0x250] sm:$0xff]  ;;  %v1728_v7 = vld [vmem:[#allocation11 + $0x2c8] sm:$0xff] }
 0x2c1   :  { %2026 = vmatprep.subr.mxu1 %v1655_v52  ;;  %2034 = vmatpush3.msra.mxu0 %v1685_v9  ;;  %v1712_v8 = vld [vmem:[#allocation11 + $0x248] sm:$0xff]  ;;  %v1727_v52 = vld [vmem:[#allocation11 + $0x2c0] sm:$0xff] }
 0x2c2   :  { %2027 = vmatpush3.msra.mxu1 %v1639_v10  ;;  %2035 = vmatprep.subr.mxu0 %v1700_v11  ;;  %v1711_v9 = vld [vmem:[#allocation11 + $0x240] sm:$0xff]  ;;  %v1726_v10 = vld [vmem:[#allocation11 + $0x2b8] sm:$0xff] }
 0x2c3   :  { %2036 = vmatpush3.msra.mxu0 %v1684_v12  ;;  %2066 = vmatprep.subr.mxu1 %v1734_v56  ;;  %v1710_v11 = vld [vmem:[#allocation11 + $0x238] sm:$0xff]  ;;  %v1725_v12 = vld [vmem:[#allocation11 + $0x2b0] sm:$0xff] }
 0x2c4   :  { %2037 = vmatprep.subr.mxu0 %v1699_v13  ;;  %v1709_v13 = vld [vmem:[#allocation11 + $0x230] sm:$0xff] }
 0x2c5   :  { %2038 = vmatpush3.msra.mxu0 %v1683_v6  ;;  %v1724_v6 = vld [vmem:[#allocation11 + $0x2a8] sm:$0xff] }
 0x2c6   :  { %2039 = vmatprep.subr.mxu0 %v1698_v14  ;;  %v1708_v14 = vld [vmem:[#allocation11 + $0x228] sm:$0xff] }
 0x2c7   :  { %2040 = vmatpush3.msra.mxu0 %v1682_v15  ;;  %v1723_v15 = vld [vmem:[#allocation11 + $0x2a0] sm:$0xff] }
 0x2c8   :  { %2041 = vmatprep.subr.mxu0 %v1697_v16  ;;  %v1707_v16 = vld [vmem:[#allocation11 + $0x220] sm:$0xff] }
 0x2c9   :  { %2042 = vmatpush3.msra.mxu0 %v1681_v17  ;;  %v1722_v17 = vld [vmem:[#allocation11 + $0x298] sm:$0xff] }
 0x2ca   :  { %2043 = vmatprep.subr.mxu0 %v1696_v2  ;;  %v1706_v2 = vld [vmem:[#allocation11 + $0x218] sm:$0xff] }
 0x2cb   :  { %2044 = vmatpush3.msra.mxu0 %v1680_v18  ;;  %v1721_v18 = vld [vmem:[#allocation11 + $0x290] sm:$0xff] }
 0x2cc   :  { %2045 = vmatprep.subr.mxu0 %v1695_v19  ;;  %v1705_v19 = vld [vmem:[#allocation11 + $0x210] sm:$0xff] }
 0x2cd   :  { %2046 = vmatpush3.msra.mxu0 %v1679_v0  ;;  %v1720_v0 = vld [vmem:[#allocation11 + $0x288] sm:$0xff] }
 0x2ce   :  { %2047 = vmatprep.subr.mxu0 %v1694_v20  ;;  %v1704_v20 = vld [vmem:[#allocation11 + $0x208] sm:$0xff] }
 0x2cf   :  { %2048 = vmatpush3.msra.mxu0 %v1678_v21  ;;  %v1719_v21 = vld [vmem:[#allocation11 + $0x280] sm:$0xff] }
 0x2d0   :  { %2049 = vmatprep.subr.mxu0 %v1693_v22  ;;  %v1703_v22 = vld [vmem:[#allocation11 + $0x200] sm:$0xff] }
 0x2d1   :  { %2050 = vmatpush3.msra.mxu0 %v1677_v23 }
 0x2d2   :  { %2051 = vmatprep.subr.mxu0 %v1692_v24 }
 0x2d3   :  { %2052 = vmatpush3.msra.mxu0 %v1676_v27  ;;  %v981_v27 = vrot.slane %v2508_v28, %v232_v39  ;;  %v989_v39 = vrot.slane %v2508_v28, %v240_v25 }
 0x2d4   :  { %2053 = vmatprep.subr.mxu0 %v1691_v29 }
 0x2d5   :  { %2054 = vmatpush3.msra.mxu0 %v1675_v31 }
 0x2d6   :  { %2055 = vmatprep.subr.mxu0 %v1690_v37 }
 0x2d7   :  { %2056 = vmatpush3.msra.mxu0 %v1674_v41 }
 0x2d8   :  { %v1208_v49 = vpop.f32.mrf.mxu0  ;;  %2057 = vmatprep.subr.mxu0 %v1689_v43 }
 0x2d9   :  { %2058 = vmatpush3.msra.mxu0 %v1673_v45  ;;  %v1209_v55 = vadd.f32 %v1208_v49, %v1138_v53  ;;  %v992_v45 = vsub.s32 5, %v2453_v33  ;;  %v1981_v33 = vld [vmem:[#allocation13] ss:$0 sm:$0xff] }
 0x2da   :  { %v1210_v34 = vpop.f32.mrf.mxu0  ;;  %2059 = vmatprep.subr.mxu0 %v1688_v47 }
 0x2db   :  { %v1211_v54 = vadd.f32 %v1210_v34, %v1140_v35  ;;  %2060 = vmatpush3.msra.mxu0 %v1672_v36  ;;  %v993_v47 = vrot.slane %v2508_v28, %v992_v45 }
 0x2dc   :  { %2061 = vmatprep.subr.mxu0 %v1687_v51 }
 0x2dd   :  { %1806 = vmatprep.mubr.f32.mxu1 %v1211_v54  ;;  %2062 = vmatpush3.msra.mxu0 %v1671_v50 }
 0x2de   :  { %1807 = vmatmul.mubr.f32.vlgmr.msra.gmra.mxu1 %v1209_v55 }
 0x2df   :  { %2067 = vmatpush3.msra.mxu1 %v1718_v57 }
 0x2e0   :  { %2068 = vmatprep.subr.mxu1 %v1733_v58 }
 0x2e1   :  { %2069 = vmatpush3.msra.mxu1 %v1717_v59 }
 0x2e2   :  { %2070 = vmatprep.subr.mxu1 %v1732_v60 }
 0x2e3   :  { %2071 = vmatpush3.msra.mxu1 %v1716_v61 }
 0x2e4   :  { %2072 = vmatprep.subr.mxu1 %v1731_v62 }
 0x2e5   :  { %2073 = vmatpush3.msra.mxu1 %v1715_v1 }
 0x2e6   :  { %2074 = vmatprep.subr.mxu1 %v1730_v3 }
 0x2e7   :  { %2075 = vmatpush3.msra.mxu1 %v1714_v63 }
 0x2e8   :  { %2076 = vmatprep.subr.mxu1 %v1729_v4 }
 0x2e9   :  { %2077 = vmatpush3.msra.mxu1 %v1713_v5 }
 0x2ea   :  { %2078 = vmatprep.subr.mxu1 %v1728_v7 }
 0x2eb   :  { %2079 = vmatpush3.msra.mxu1 %v1712_v8 }
 0x2ec   :  { %2080 = vmatprep.subr.mxu1 %v1727_v52 }
 0x2ed   :  { %2081 = vmatpush3.msra.mxu1 %v1711_v9 }
 0x2ee   :  { %2082 = vmatprep.subr.mxu1 %v1726_v10 }
 0x2ef   :  { %2083 = vmatpush3.msra.mxu1 %v1710_v11 }
 0x2f0   :  { %2084 = vmatprep.subr.mxu1 %v1725_v12 }
 0x2f1   :  { %2085 = vmatpush3.msra.mxu1 %v1709_v13 }
 0x2f2   :  { %2086 = vmatprep.subr.mxu1 %v1724_v6 }
 0x2f3   :  { %2087 = vmatpush3.msra.mxu1 %v1708_v14 }
 0x2f4   :  { %2088 = vmatprep.subr.mxu1 %v1723_v15 }
 0x2f5   :  { %2089 = vmatpush3.msra.mxu1 %v1707_v16 }
 0x2f6   :  { %2090 = vmatprep.subr.mxu1 %v1722_v17 }
 0x2f7   :  { %2091 = vmatpush3.msra.mxu1 %v1706_v2 }
 0x2f8   :  { %2092 = vmatprep.subr.mxu1 %v1721_v18 }
 0x2f9   :  { %2093 = vmatpush3.msra.mxu1 %v1705_v19 }
 0x2fa   :  { %2094 = vmatprep.subr.mxu1 %v1720_v0 }
 0x2fb   :  { %2095 = vmatpush3.msra.mxu1 %v1704_v20 }
 0x2fc   :  { %2096 = vmatprep.subr.mxu1 %v1719_v21 }
 0x2fd   :  { %2097 = vmatpush3.msra.mxu1 %v1703_v22 }
 0x2fe   :  { %v1279_v23 = vpop.f32.mrf.mxu1 }
 0x2ff   :  { %v1280_v32 = vadd.f32 %v1279_v23, %v981_v27 }
 0x300   :  { %v1281_v29 = vpop.f32.mrf.mxu1 }
 0x301   :  { %v1282_v31 = vadd.f32 %v1281_v29, %v985_v26 }
 0x319   :  { %v1350_v24 = vpop.f32.mrf.mxu0 }
 0x31a   :  { %v1351_v40 = vadd.f32 %v1350_v24, %v1280_v32 }
 0x31b   :  { %v1352_v30 = vpop.f32.mrf.mxu0 }
 0x31c   :  { %v1353_v38 = vadd.f32 %v1352_v30, %v1282_v31 }
 0x320   :  { %v1421_v37 = vpop.f32.mrf.mxu1 }
 0x321   :  { %v1422_v44 = vadd.f32 %v1421_v37, %v1351_v40 }
 0x322   :  { %v1423_v41 = vpop.f32.mrf.mxu1 }
 0x323   :  { %v1424_v43 = vadd.f32 %v1423_v41, %v1353_v38 }
 0x325   :  { %1876 = vmatprep.mubr.f32.mxu0 %v1424_v43 }
 0x326   :  { %1877 = vmatmul.mubr.f32.vlgmr.msra.gmra.mxu0 %v1422_v44 }
 0x35c   :  { %v1492_v46 = vpop.f32.mrf.mxu0 }
 0x35d   :  { %v1493_v35 = vadd.f32 %v1492_v46, %v989_v39 }
 0x35e   :  { %v1494_v48 = vpop.f32.mrf.mxu0 }
 0x35f   :  { %v1495_v36 = vadd.f32 %v1494_v48, %v993_v47 }
 0x361   :  { %v1563_v42 = vpop.f32.mrf.mxu1 }
 0x362   :  { %v1564_v34 = vadd.f32 %v1563_v42, %v1493_v35 }
 0x363   :  { %v1565_v49 = vpop.f32.mrf.mxu1 }
 0x364   :  { %v1566_v53 = vadd.f32 %v1565_v49, %v1495_v36 }
 0x37d   :  { %v1634_v51 = vpop.f32.mrf.mxu0 }
 0x37e   :  { %v1635_v55 = vadd.f32 %v1634_v51, %v1564_v34 }
 0x37f   :  { %v1636_v50 = vpop.f32.mrf.mxu0 }
 0x380   :  { %v1637_v54 = vadd.f32 %v1636_v50, %v1566_v53 }
 0x382   :  { %1946 = vmatprep.mubr.f32.mxu1 %v1637_v54 }
 0x383   :  { %1947 = vmatmul.mubr.f32.vlgmr.msra.gmra.mxu1 %v1635_v55 }
 0x39e   :  { %v2028_v56 = vpop.f32.mrf.mxu1 }
 0x3a0   :  { %v2029_v58 = vpop.f32.mrf.mxu1 }
 0x3a1   :  { %v2030_v60 = vadd.f32 %v2029_v58, %v2028_v56 }
 0x3a3   :  { %v1809_v28 = vadd.f32 %v2030_v60, %v1981_v33 }
 0x3e6   :  { %v2063_v57 = vpop.f32.mrf.mxu0 }
 0x3e8   :  { %v2064_v59 = vpop.f32.mrf.mxu0 }
 0x3e9   :  { %v2065_v61 = vadd.f32 %v2064_v59, %v2063_v57 }
 0x3eb   :  { %v1879_v1 = vadd.f32 %v2065_v61, %v1809_v28 }
 0x443   :  { %v2098_v25 = vpop.f32.mrf.mxu1 }
 0x445   :  { %v2099_v62 = vpop.f32.mrf.mxu1 }
 0x446   :  { %v2100_v3 = vadd.f32 %v2099_v62, %v2098_v25 }
 0x448   :  { %v1949_v63 = vadd.f32 %v2100_v3, %v1879_v1 }
 0x44a   :  { %1952 = vst [vmem:[#allocation14] sm:$0x3] %v1949_v63 }
 0x44b   :  { %2298 = shalt.err (!%p2295_p11)
}
 0x44c   :  { %1962 = dma.vmem_to_hbm [thread:$0]  %s1960_s12, 32, %s2538_s8, [#allocation4]  }
 0x44d   :  { %2315 = dma.done.wait [#allocation4], 32  }
 0x44e   :  { %2316 = vsyncadd [#allocation4], 4294967264 }
 0x44f   :  { %1966 = vsyncpa [#allocation3], 1 }
 0x450   :  { %1967 = vsyncpa [#allocation6], 1 }
 0x451   :  { %1968 = vsyncpa [#allocation9], 1 }
 0x452   :  { %1969 = vsyncpa [#allocation12], 1 }
 0x453   :  { %1970 = vsyncpa [#allocation4], 1 }

</bundles_post_ra>
